<compile_context>
chip_gen: v7x
topology: tpu7x:2x2x1
jax: 0.10.0
libtpu: 0.0.40
codegen_flags: <defaults>
</compile_context>

<pallas_src>
import functools

import numpy as np
import jax
import jax.numpy as jnp
from jax.experimental import pallas as pl
from jax.experimental.pallas import tpu as pltpu

_MIB = 1024 * 1024
_TM_CANDIDATES = (512, 384, 256, 192, 128, 96, 64, 48, 32, 16, 8)


def _round_up(a, b):
    return (a + b - 1) // b * b


def _vmem_limit_bytes():
    """Generation-aware usable-VMEM budget for this kernel."""
    phys = 0
    try:
        phys = int(getattr(pltpu.get_tpu_info(), "vmem_capacity_bytes", 0))
    except Exception:
        phys = 0
    if phys <= 0:
        phys = 64 * _MIB                       # conservative (v7x per-TC VMEM)
    if phys >= 128 * _MIB:
        return 100 * _MIB                      # v5e / v6e
    return max(32 * _MIB, phys - 18 * _MIB)    # v7x: ~46 MiB of 64 MiB


def _tm_cap(per_tm_bytes, fixed_bytes, vmem_limit):
    """Largest batch tile whose VMEM footprint fits the budget (0 if none)."""
    for tm in _TM_CANDIDATES:
        if fixed_bytes + per_tm_bytes(tm) <= vmem_limit:
            return tm
    return 0


def _pick_tiles(N, tm_cap):
    """Pick (TM, n_pad) minimising tail padding; >=2 tiles when N > 128 so a
    2-TensorCore chip (v7x) can shard the 'parallel' batch axis."""
    n_tiles = -(-N // tm_cap)
    if N > 128 and n_tiles < 2:
        n_tiles = 2
    tm = min(tm_cap, max(8, _round_up(-(-N // n_tiles), 8)))
    n_pad = _round_up(N, tm)
    return tm, n_pad


# --------------------------------------------------------------------------
# Kernels
# --------------------------------------------------------------------------
def _fused_fft_conv_kernel(x_ref, d_ref, w_ref, b_ref, o_ref, *, tpp,
                           negative_slope):
    """Fused DFT + |.| + conv + LeakyReLU (dense DFT resident in VMEM).

    x_ref: (TM, K) f32      d_ref: (K, 2*tpp) bf16  [cos | sin]
    w_ref: (tpp, Fp) bf16   b_ref: (1, Fp) f32      o_ref: (TM, Fp) f32
    """
    x = x_ref[...].astype(jnp.bfloat16)                     # in-kernel cast
    y = jnp.dot(x, d_ref[...], preferred_element_type=jnp.float32)
    re = y[:, :tpp]                                          # lane-aligned halves
    im = y[:, tpp:]
    mag = jnp.sqrt(re * re + im * im).astype(w_ref.dtype)    # |rfft(x)|
    # Conv3d with a full-extent (T, 8, 8) kernel == plain matmul.
    out = jnp.dot(mag, w_ref[...],
                  preferred_element_type=jnp.float32) + b_ref[...]
    # Dropout3d is identity in eval mode; LeakyReLU(negative_slope).
    o_ref[...] = jnp.where(out >= 0.0, out, negative_slope * out)


def _mag_conv_kernel(reim_ref, w_ref, b_ref, o_ref, *, tpp, negative_slope):
    """Large-sws tail: reim_ref (TM, 2*tpp) f32 holds [re | im] of rfft."""
    y = reim_ref[...]
    re = y[:, :tpp]
    im = y[:, tpp:]
    mag = jnp.sqrt(re * re + im * im).astype(w_ref.dtype)
    out = jnp.dot(mag, w_ref[...],
                  preferred_element_type=jnp.float32) + b_ref[...]
    o_ref[...] = jnp.where(out >= 0.0, out, negative_slope * out)


# --------------------------------------------------------------------------
# Factory
# --------------------------------------------------------------------------
def make_fft_feature_forward(conv_w, conv_b, *, sws, negative_slope=0.02,
                             force_fallback=False):
    """Build constants once, return a jitted forward(x) closure.

    conv_w: (F, 1, T, 8, 8), conv_b: (F,), with T = sws // 2 + 1."""
    F = int(conv_w.shape[0])
    T = sws // 2 + 1
    P = 64                       # 8 * 8 spatial positions
    K = sws * P                  # flattened (time-major, spatial-minor) length
    TP = T * P
    TPp = _round_up(TP, 128)     # lane-aligned padded feature width
    Fp = _round_up(F, 128)       # lane-dense padded filter width

    vmem_limit = _vmem_limit_bytes()

    # Conv weights (F, 1, T, 8, 8) -> (TPp, Fp), feature order (t*64 + p).
    w_np = np.zeros((TPp, Fp), dtype=np.float32)
    w_np[:TP, :F] = (np.asarray(conv_w, dtype=np.float32)
                     .reshape(F, T, P).transpose(1, 2, 0).reshape(TP, F))
    w_mat = jnp.asarray(w_np).astype(jnp.bfloat16)

    b_np = np.zeros((1, Fp), dtype=np.float32)
    b_np[0, :F] = np.asarray(conv_b, dtype=np.float32)
    b_row = jnp.asarray(b_np)

    # DFT angle table (shared by both paths).
    s = np.arange(sws, dtype=np.float64)[:, None]
    t = np.arange(T, dtype=np.float64)[None, :]
    ang = 2.0 * np.pi * s * t / float(sws)

    # --- decide: dense fused DFT resident in VMEM, or wrapper-einsum DFT ---
    # Conservative accounting: Pallas double-buffers every input BlockSpec, so
    # D / w / bias are counted twice even though their index maps are constant.
    d_bytes = K * (2 * TPp) * 2                                   # bf16 D
    fused_fixed = 2 * d_bytes + 2 * (TPp * Fp * 2) + 2 * (Fp * 4) + 2 * _MIB
    fused_per_tm = lambda tm: 2 * tm * K * 4 + 2 * tm * Fp * 4    # x f32 + out
    fused_tm_cap = _tm_cap(fused_per_tm, fused_fixed, vmem_limit)

    use_fused = (fused_tm_cap >= 8) and not force_fallback

    compiler_params = pltpu.CompilerParams(
        dimension_semantics=("parallel",),
        vmem_limit_bytes=int(vmem_limit),
    )

    if use_fused:
        # Fused [cos | sin] DFT matrix, zero-padded to lane-aligned widths.
        eye = np.eye(P, dtype=np.float64)
        cos_big = np.zeros((K, TPp), dtype=np.float64)
        sin_big = np.zeros((K, TPp), dtype=np.float64)
        cos_big[:, :TP] = np.kron(np.cos(ang), eye)               # real part
        sin_big[:, :TP] = np.kron(-np.sin(ang), eye)              # imag part
        d_mat = jnp.asarray(
            np.concatenate([cos_big, sin_big], axis=1).astype(np.float32)
        ).astype(jnp.bfloat16)                                    # (K, 2*TPp)

        kernel = functools.partial(_fused_fft_conv_kernel, tpp=TPp,
                                   negative_slope=negative_slope)
        tm_cap = fused_tm_cap

        @jax.jit
        def forward(x):
            N = x.shape[0]
            assert x.shape[1:] == (1, sws, 8, 8), x.shape
            tm, n_pad = _pick_tiles(N, tm_cap)
            xf = x.reshape(N, K).astype(jnp.float32)   # f32; bf16 cast in-kernel
            if n_pad != N:
                xf = jnp.pad(xf, ((0, n_pad - N), (0, 0)))
            out = pl.pallas_call(
                kernel,
                out_shape=jax.ShapeDtypeStruct((n_pad, Fp), jnp.float32),
                grid=(n_pad // tm,),
                in_specs=[
                    pl.BlockSpec((tm, K), lambda i: (i, 0)),        # x tile
                    pl.BlockSpec((K, 2 * TPp), lambda i: (0, 0)),   # resident DFT
                    pl.BlockSpec((TPp, Fp), lambda i: (0, 0)),      # conv weight
                    pl.BlockSpec((1, Fp), lambda i: (0, 0)),        # bias
                ],
                out_specs=pl.BlockSpec((tm, Fp), lambda i: (i, 0)),
                compiler_params=compiler_params,
            )(xf, d_mat, w_mat, b_row)
            return out[:N, :F]

    else:
        # Large-sws path: the 64x-redundant kron-dense DFT cannot be VMEM
        # resident, so the tiny (sws -> T) cos/sin contraction runs as a
        # wrapper einsum; Pallas does |.| + conv-matmul + bias + LeakyReLU.
        cos_small = jnp.asarray(np.cos(ang).astype(np.float32))    # (sws, T)
        sin_small = jnp.asarray((-np.sin(ang)).astype(np.float32))

        kernel = functools.partial(_mag_conv_kernel, tpp=TPp,
                                   negative_slope=negative_slope)
        fb_fixed = 2 * (TPp * Fp * 2) + 2 * (Fp * 4) + 2 * _MIB
        fb_per_tm = lambda tm: 2 * tm * (2 * TPp) * 4 + 2 * tm * Fp * 4
        tm_cap = _tm_cap(fb_per_tm, fb_fixed, vmem_limit)
        assert tm_cap >= 8, "even a TM=8 tile does not fit the VMEM budget"

        @jax.jit
        def forward(x):
            N = x.shape[0]
            assert x.shape[1:] == (1, sws, 8, 8), x.shape
            tm, n_pad = _pick_tiles(N, tm_cap)
            xr = x.reshape(N, sws, P).astype(jnp.float32)
            re = jnp.einsum('nsp,st->ntp', xr, cos_small).reshape(N, TP)
            im = jnp.einsum('nsp,st->ntp', xr, sin_small).reshape(N, TP)
            reim = jnp.concatenate([
                jnp.pad(re, ((0, n_pad - N), (0, TPp - TP))),
                jnp.pad(im, ((0, n_pad - N), (0, TPp - TP))),
            ], axis=1)                                             # (n_pad, 2*TPp)
            out = pl.pallas_call(
                kernel,
                out_shape=jax.ShapeDtypeStruct((n_pad, Fp), jnp.float32),
                grid=(n_pad // tm,),
                in_specs=[
                    pl.BlockSpec((tm, 2 * TPp), lambda i: (i, 0)),  # [re|im]
                    pl.BlockSpec((TPp, Fp), lambda i: (0, 0)),      # conv weight
                    pl.BlockSpec((1, Fp), lambda i: (0, 0)),        # bias
                ],
                out_specs=pl.BlockSpec((tm, Fp), lambda i: (i, 0)),
                compiler_params=compiler_params,
            )(reim, w_mat, b_row)
            return out[:N, :F]

    return forward


def reference_forward(x, conv_w, conv_b, *, negative_slope=0.02):
    """Pure-JAX f32 reference matching the PyTorch module (eval mode)."""
    N = x.shape[0]
    F = conv_w.shape[0]
    mag = jnp.abs(jnp.fft.rfft(x.astype(jnp.float32), axis=2))     # (N,1,T,8,8)
    feat = mag.reshape(N, -1)
    w = conv_w.reshape(F, -1).astype(jnp.float32)
    out = feat @ w.T + conv_b[None, :].astype(jnp.float32)
    return jnp.where(out >= 0, out, negative_slope * out)


if __name__ == "__main__":
    # Small deterministic configuration consistent with the module.
    N, sws, num_filters = 2, 16, 48
    T = sws // 2 + 1
    negative_slope = 0.02

    key = jax.random.PRNGKey(0)
    kx, kw, kb = jax.random.split(key, 3)

    x = jax.random.normal(kx, (N, 1, sws, 8, 8), dtype=jnp.float32)

    # Deterministic Conv3d-style init (uniform +-1/sqrt(fan_in)).
    fan_in = 1 * T * 8 * 8
    bound = 1.0 / np.sqrt(fan_in)
    conv_w = jax.random.uniform(kw, (num_filters, 1, T, 8, 8),
                                minval=-bound, maxval=bound, dtype=jnp.float32)
    conv_b = jax.random.uniform(kb, (num_filters,),
                                minval=-bound, maxval=bound, dtype=jnp.float32)

    ref = jax.block_until_ready(
        reference_forward(x, conv_w, conv_b, negative_slope=negative_slope))

    # Primary path: dense [cos|sin] DFT resident in VMEM, single fused kernel.
    forward = make_fft_feature_forward(conv_w, conv_b, sws=sws,
                                       negative_slope=negative_slope)
    out = jax.block_until_ready(forward(x))
    assert out.shape == (N, num_filters), out.shape
    # bf16 MXU operands (f32 accumulation) vs an all-f32 reference.
    np.testing.assert_allclose(np.asarray(out), np.asarray(ref),
                               rtol=2e-2, atol=2e-2)

    # Large-sws path (wrapper-einsum DFT + Pallas |.|/conv/LeakyReLU), forced
    # here at small sws purely to validate correctness of the fallback.
    forward_fb = make_fft_feature_forward(conv_w, conv_b, sws=sws,
                                          negative_slope=negative_slope,
                                          force_fallback=True)
    out_fb = jax.block_until_ready(forward_fb(x))
    np.testing.assert_allclose(np.asarray(out_fb), np.asarray(ref),
                               rtol=2e-2, atol=2e-2)

    print("KERNEL_OK")
</pallas_src>

<mosaic_0001>
module attributes {stable_mosaic.version = 11 : i64} {
  func.func @_fused_fft_conv_kernel(%arg0: i32, %arg1: memref<8x1024xf32, #tpu.memory_space<vmem>>, %arg2: memref<1024x1280xbf16, #tpu.memory_space<vmem>>, %arg3: memref<640x128xbf16, #tpu.memory_space<vmem>>, %arg4: memref<1x128xf32, #tpu.memory_space<vmem>>, %arg5: memref<8x128xf32, #tpu.memory_space<vmem>>) attributes {dimension_semantics = [#tpu.dimension_semantics<parallel>], iteration_bounds = array<i64: 1>, scalar_prefetch = 0 : i64, scratch_operands = 0 : i64, tpu.core_type = #tpu.core_type<tc>, window_params = [{transform_indices = @transform_0, window_bounds = array<i64: 8, 1024>}, {pipeline_mode = #tpu.pipeline_mode<synchronous>, transform_indices = @transform_1, window_bounds = array<i64: 1024, 1280>}, {pipeline_mode = #tpu.pipeline_mode<synchronous>, transform_indices = @transform_2, window_bounds = array<i64: 640, 128>}, {pipeline_mode = #tpu.pipeline_mode<synchronous>, transform_indices = @transform_3, window_bounds = array<i64: 1, 128>}, {transform_indices = @transform_4, window_bounds = array<i64: 8, 128>}]} {
    %c0 = arith.constant 0 : index
    %c0_0 = arith.constant 0 : index
    %0 = vector.load %arg1[%c0, %c0_0] : memref<8x1024xf32, #tpu.memory_space<vmem>>, vector<8x1024xf32>
    %1 = arith.truncf %0 : vector<8x1024xf32> to vector<8x1024xbf16>
    %c0_1 = arith.constant 0 : index
    %c0_2 = arith.constant 0 : index
    %2 = vector.load %arg2[%c0_1, %c0_2] : memref<1024x1280xbf16, #tpu.memory_space<vmem>>, vector<1024x1280xbf16>
    %cst = arith.constant dense<0.000000e+00> : vector<8x1280xf32>
    %3 = tpu.matmul %1, %2, %cst {dimension_numbers = #tpu.dot_dimension_numbers<[1], [0], [0], [1], [0, 0, 1, 1], [], []>} : vector<8x1024xbf16>, vector<1024x1280xbf16>, vector<8x1280xf32> -> vector<8x1280xf32>
    %4 = vector.extract_strided_slice %3 {offsets = [0, 0], sizes = [8, 640], strides = [1, 1]} : vector<8x1280xf32> to vector<8x640xf32>
    %5 = vector.extract_strided_slice %3 {offsets = [0, 640], sizes = [8, 640], strides = [1, 1]} : vector<8x1280xf32> to vector<8x640xf32>
    %6 = arith.mulf %4, %4 : vector<8x640xf32>
    %7 = arith.mulf %5, %5 : vector<8x640xf32>
    %8 = arith.addf %6, %7 : vector<8x640xf32>
    %9 = math.sqrt %8 : vector<8x640xf32>
    %10 = arith.truncf %9 : vector<8x640xf32> to vector<8x640xbf16>
    %c0_3 = arith.constant 0 : index
    %c0_4 = arith.constant 0 : index
    %11 = vector.load %arg3[%c0_3, %c0_4] : memref<640x128xbf16, #tpu.memory_space<vmem>>, vector<640x128xbf16>
    %cst_5 = arith.constant dense<0.000000e+00> : vector<8x128xf32>
    %12 = tpu.matmul %10, %11, %cst_5 {dimension_numbers = #tpu.dot_dimension_numbers<[1], [0], [0], [1], [0, 0, 1, 1], [], []>} : vector<8x640xbf16>, vector<640x128xbf16>, vector<8x128xf32> -> vector<8x128xf32>
    %c0_6 = arith.constant 0 : index
    %c0_7 = arith.constant 0 : index
    %13 = vector.load %arg4[%c0_6, %c0_7] : memref<1x128xf32, #tpu.memory_space<vmem>>, vector<1x128xf32>
    %14 = vector.broadcast %13 : vector<1x128xf32> to vector<8x128xf32>
    %15 = arith.addf %12, %14 : vector<8x128xf32>
    %cst_8 = arith.constant 0.000000e+00 : f32
    %16 = vector.broadcast %cst_8 : f32 to vector<8x128xf32>
    %17 = arith.cmpf oge, %15, %16 : vector<8x128xf32>
    %cst_9 = arith.constant 2.000000e-02 : f32
    %18 = vector.broadcast %cst_9 : f32 to vector<8x128xf32>
    %19 = arith.mulf %18, %15 : vector<8x128xf32>
    %20 = arith.select %17, %15, %19 : vector<8x128xi1>, vector<8x128xf32>
    %c0_10 = arith.constant 0 : index
    %c0_11 = arith.constant 0 : index
    %21 = vector.load %arg5[%c0_10, %c0_11] : memref<8x128xf32, #tpu.memory_space<vmem>>, vector<8x128xf32>
    tpu.vector_store %arg5[%c0_10, %c0_11], %20 {strides = array<i32>} : memref<8x128xf32, #tpu.memory_space<vmem>>, vector<8x128xf32>,
    return
  }
  func.func @transform_0(%arg0: i32) -> (i32, i32) {
    %c0_i32 = arith.constant 0 : i32
    %c0_i32_0 = arith.constant 0 : i32
    return %arg0, %c0_i32 : i32, i32
  }
  func.func @transform_1(%arg0: i32) -> (i32, i32) {
    %c0_i32 = arith.constant 0 : i32
    %c0_i32_0 = arith.constant 0 : i32
    %c0_i32_1 = arith.constant 0 : i32
    return %c0_i32, %c0_i32_0 : i32, i32
  }
  func.func @transform_2(%arg0: i32) -> (i32, i32) {
    %c0_i32 = arith.constant 0 : i32
    %c0_i32_0 = arith.constant 0 : i32
    %c0_i32_1 = arith.constant 0 : i32
    return %c0_i32, %c0_i32_0 : i32, i32
  }
  func.func @transform_3(%arg0: i32) -> (i32, i32) {
    %c0_i32 = arith.constant 0 : i32
    %c0_i32_0 = arith.constant 0 : i32
    %c0_i32_1 = arith.constant 0 : i32
    return %c0_i32, %c0_i32_0 : i32, i32
  }
  func.func @transform_4(%arg0: i32) -> (i32, i32) {
    %c0_i32 = arith.constant 0 : i32
    %c0_i32_0 = arith.constant 0 : i32
    return %arg0, %c0_i32 : i32, i32
  }
}

</mosaic_0001>

<bundles_post_ra>
// kernel: forward.1
= control target key start
LH: loop header
LB: loop body
LE: loop exit
PB: predicated region body
PF: predicated region fallthrough
CT: control target
= control target key end

     0   :  { %vm7029_vm8 = vmmov 0   ;;  %s9223_s1 = inlined_call_operand.vmem [shape: bf16[1024,1280], index: 1, kind: input, shape index: {}]   ;;  %s9224_s0 = inlined_call_operand.vmem [shape: f32[8,1024], index: 0, kind: input, shape index: {}]   ;;  %s9225_s2 = inlined_call_operand.vmem [shape: bf16[640,128], index: 2, kind: input, shape index: {}]   ;;  %s9226_s3 = inlined_call_operand.vmem [shape: f32[1,128], index: 3, kind: input, shape index: {}]   ;;  %s9227_s4 = inlined_call_operand.vmem [shape: f32[8,128], index: 4, kind: output, shape index: {}]  }
   0x1   :  { %v6018_v0 = vld [vmem:[%s9223_s1 + $0x4] ss:$40 sps:$4 sm:$0xff]   ;;  %v6022_v2 = vld [vmem:[%s9223_s1] ss:$40 sps:$4 sm:$0xff]   ;;  %v6024_v4 = vld [vmem:[%s9223_s1 + $0x54] ss:$40 sps:$4 sm:$0xff]  }
   0x2   :  { %v6020_v1 = vld [vmem:[%s9223_s1 + $0x504] ss:$40 sps:$4 sm:$0xff]   ;;  %3874 = vmatprep.subr.bf16.mxu1 %v6018_v0  ;;  %v6023_v3 = vld [vmem:[%s9223_s1 + $0x500] ss:$40 sps:$4 sm:$0xff]   ;;  %v6026_v5 = vld [vmem:[%s9223_s1 + $0x554] ss:$40 sps:$4 sm:$0xff]  }
   0x3   :  { %3915 = vmatprep.subr.bf16.mxu0 %v6020_v1  ;;  %3875 = vmatpush1.bf16.msra.mxu1 %v6022_v2  ;;  %v6028_v6 = vld [vmem:[%s9223_s1 + $0x50] ss:$40 sps:$4 sm:$0xff]   ;;  %v6030_v8 = vld [vmem:[%s9223_s1 + $0xa4] ss:$40 sps:$4 sm:$0xff]   ;;  %v6034_v10 = vld [vmem:[%s9223_s1 + $0xa0] ss:$40 sps:$4 sm:$0xff]  }
   0x4   :  { %3916 = vmatpush1.bf16.msra.mxu0 %v6023_v3  ;;  %3876 = vmatprep.subr.bf16.mxu1 %v6024_v4  ;;  %v6029_v7 = vld [vmem:[%s9223_s1 + $0x550] ss:$40 sps:$4 sm:$0xff]   ;;  %v6032_v9 = vld [vmem:[%s9223_s1 + $0x5a4] ss:$40 sps:$4 sm:$0xff]   ;;  %v6035_v11 = vld [vmem:[%s9223_s1 + $0x5a0] ss:$40 sps:$4 sm:$0xff]  }
   0x5   :  { %3917 = vmatprep.subr.bf16.mxu0 %v6026_v5  ;;  %v6036_v12 = vld [vmem:[%s9223_s1 + $0xf4] ss:$40 sps:$4 sm:$0xff]   ;;  %v6040_v14 = vld [vmem:[%s9223_s1 + $0xf0] ss:$40 sps:$4 sm:$0xff]   ;;  %v6042_v16 = vld [vmem:[%s9223_s1 + $0x144] ss:$40 sps:$4 sm:$0xff]  }
   0x6   :  { %v6038_v13 = vld [vmem:[%s9223_s1 + $0x5f4] ss:$40 sps:$4 sm:$0xff]   ;;  %v6041_v15 = vld [vmem:[%s9223_s1 + $0x5f0] ss:$40 sps:$4 sm:$0xff]   ;;  %v6044_v17 = vld [vmem:[%s9223_s1 + $0x644] ss:$40 sps:$4 sm:$0xff]  }
   0x7   :  { %3877 = vmatpush1.bf16.msra.mxu1 %v6028_v6  ;;  %v6046_v18 = vld [vmem:[%s9223_s1 + $0x140] ss:$40 sps:$4 sm:$0xff]   ;;  %v6048_v20 = vld [vmem:[%s9223_s1 + $0x194] ss:$40 sps:$4 sm:$0xff]   ;;  %v6052_v22 = vld [vmem:[%s9223_s1 + $0x190] ss:$40 sps:$4 sm:$0xff]  }
   0x8   :  { %3918 = vmatpush1.bf16.msra.mxu0 %v6029_v7  ;;  %3878 = vmatprep.subr.bf16.mxu1 %v6030_v8  ;;  %v6047_v19 = vld [vmem:[%s9223_s1 + $0x640] ss:$40 sps:$4 sm:$0xff]   ;;  %v6050_v21 = vld [vmem:[%s9223_s1 + $0x694] ss:$40 sps:$4 sm:$0xff]   ;;  %v6053_v23 = vld [vmem:[%s9223_s1 + $0x690] ss:$40 sps:$4 sm:$0xff]  }
   0x9   :  { %3919 = vmatprep.subr.bf16.mxu0 %v6032_v9  ;;  %v6054_v24 = vld [vmem:[%s9223_s1 + $0x1e4] ss:$40 sps:$4 sm:$0xff]   ;;  %v6058_v26 = vld [vmem:[%s9223_s1 + $0x1e0] ss:$40 sps:$4 sm:$0xff]   ;;  %v6060_v28 = vld [vmem:[%s9223_s1 + $0x234] ss:$40 sps:$4 sm:$0xff]  }
   0xa   :  { %v6056_v25 = vld [vmem:[%s9223_s1 + $0x6e4] ss:$40 sps:$4 sm:$0xff]   ;;  %v6059_v27 = vld [vmem:[%s9223_s1 + $0x6e0] ss:$40 sps:$4 sm:$0xff]   ;;  %v6062_v29 = vld [vmem:[%s9223_s1 + $0x734] ss:$40 sps:$4 sm:$0xff]  }
   0xb   :  { %3879 = vmatpush1.bf16.msra.mxu1 %v6034_v10  ;;  %v6064_v30 = vld [vmem:[%s9223_s1 + $0x230] ss:$40 sps:$4 sm:$0xff]   ;;  %v6066_v32 = vld [vmem:[%s9223_s1 + $0x284] ss:$40 sps:$4 sm:$0xff]   ;;  %v6070_v34 = vld [vmem:[%s9223_s1 + $0x280] ss:$40 sps:$4 sm:$0xff]  }
   0xc   :  { %3920 = vmatpush1.bf16.msra.mxu0 %v6035_v11  ;;  %3880 = vmatprep.subr.bf16.mxu1 %v6036_v12  ;;  %v6065_v31 = vld [vmem:[%s9223_s1 + $0x730] ss:$40 sps:$4 sm:$0xff]   ;;  %v6068_v33 = vld [vmem:[%s9223_s1 + $0x784] ss:$40 sps:$4 sm:$0xff]   ;;  %v6071_v35 = vld [vmem:[%s9223_s1 + $0x780] ss:$40 sps:$4 sm:$0xff]  }
   0xd   :  { %3921 = vmatprep.subr.bf16.mxu0 %v6038_v13  ;;  %v6072_v36 = vld [vmem:[%s9223_s1 + $0x2d4] ss:$40 sps:$4 sm:$0xff]   ;;  %v6076_v38 = vld [vmem:[%s9223_s1 + $0x2d0] ss:$40 sps:$4 sm:$0xff]   ;;  %v6078_v40 = vld [vmem:[%s9223_s1 + $0x324] ss:$40 sps:$4 sm:$0xff]  }
   0xe   :  { %v6074_v37 = vld [vmem:[%s9223_s1 + $0x7d4] ss:$40 sps:$4 sm:$0xff]   ;;  %v6077_v39 = vld [vmem:[%s9223_s1 + $0x7d0] ss:$40 sps:$4 sm:$0xff]   ;;  %v6080_v41 = vld [vmem:[%s9223_s1 + $0x824] ss:$40 sps:$4 sm:$0xff]  }
   0xf   :  { %3881 = vmatpush1.bf16.msra.mxu1 %v6040_v14  ;;  %v6082_v42 = vld [vmem:[%s9223_s1 + $0x320] ss:$40 sps:$4 sm:$0xff]   ;;  %v6084_v44 = vld [vmem:[%s9223_s1 + $0x374] ss:$40 sps:$4 sm:$0xff]   ;;  %v6088_v49 = vld [vmem:[%s9223_s1 + $0x370] ss:$40 sps:$4 sm:$0xff]  }
  0x10   :  { %3922 = vmatpush1.bf16.msra.mxu0 %v6041_v15  ;;  %3882 = vmatprep.subr.bf16.mxu1 %v6042_v16  ;;  %v6083_v43 = vld [vmem:[%s9223_s1 + $0x820] ss:$40 sps:$4 sm:$0xff]   ;;  %v6086_v45 = vld [vmem:[%s9223_s1 + $0x874] ss:$40 sps:$4 sm:$0xff]   ;;  %v6089_v50 = vld [vmem:[%s9223_s1 + $0x870] ss:$40 sps:$4 sm:$0xff]  }
  0x11   :  { %3923 = vmatprep.subr.bf16.mxu0 %v6044_v17  ;;  %v19_v46 = vld [vmem:[%s9224_s0 + $0x8] sm:$0xff]  ;;  %v21_v48 = vld [vmem:[%s9224_s0 + $0x18] sm:$0xff]  ;;  %v18_v5 = vld [vmem:[%s9224_s0] sm:$0xff] }
  0x12   :  { %v7196_v47 = vpack.c.bf16 %v19_v46, %v19_v46  ;;  %v7207_v51 = vpack.c.bf16 %v21_v48, %v21_v48  ;;  %v6090_v52 = vld [vmem:[%s9223_s1 + $0x3c4] ss:$40 sps:$4 sm:$0xff]   ;;  %v6094_v54 = vld [vmem:[%s9223_s1 + $0x3c0] ss:$40 sps:$4 sm:$0xff]   ;;  %v6096_v56 = vld [vmem:[%s9223_s1 + $0x414] ss:$40 sps:$4 sm:$0xff]   ;;  %v7277_v10 = vpack.c.bf16 %v18_v5, %v18_v5 }
  0x13   :  { %3883 = vmatpush1.bf16.msra.mxu1 %v6046_v18  ;;  %v6092_v53 = vld [vmem:[%s9223_s1 + $0x8c4] ss:$40 sps:$4 sm:$0xff]   ;;  %v6095_v55 = vld [vmem:[%s9223_s1 + $0x8c0] ss:$40 sps:$4 sm:$0xff]   ;;  %v6098_v57 = vld [vmem:[%s9223_s1 + $0x914] ss:$40 sps:$4 sm:$0xff]  }
  0x14   :  { %3924 = vmatpush1.bf16.msra.mxu0 %v6047_v19  ;;  %3884 = vmatprep.subr.bf16.mxu1 %v6048_v20  ;;  %v6100_v58 = vld [vmem:[%s9223_s1 + $0x410] ss:$40 sps:$4 sm:$0xff]   ;;  %v6102_v60 = vld [vmem:[%s9223_s1 + $0x464] ss:$40 sps:$4 sm:$0xff]   ;;  %v6106_v62 = vld [vmem:[%s9223_s1 + $0x460] ss:$40 sps:$4 sm:$0xff]  }
  0x15   :  { %3925 = vmatprep.subr.bf16.mxu0 %v6050_v21  ;;  %3906 = vmatprep.mubr.bf16.mxu1 %v7196_v47  ;;  %v6101_v59 = vld [vmem:[%s9223_s1 + $0x910] ss:$40 sps:$4 sm:$0xff]   ;;  %v6104_v61 = vld [vmem:[%s9223_s1 + $0x964] ss:$40 sps:$4 sm:$0xff]   ;;  %v6107_v63 = vld [vmem:[%s9223_s1 + $0x960] ss:$40 sps:$4 sm:$0xff]  }
  0x16   :  { %3947 = vmatprep.mubr.bf16.mxu0 %v7207_v51  ;;  %v6108_v0 = vld [vmem:[%s9223_s1 + $0x4b4] ss:$40 sps:$4 sm:$0xff]   ;;  %v6112_v2 = vld [vmem:[%s9223_s1 + $0x4b0] ss:$40 sps:$4 sm:$0xff]   ;;  %v6116_v4 = vld [vmem:[%s9223_s1 + $0xa04] ss:$40 sps:$4 sm:$0xff]  }
  0x17   :  { %3885 = vmatpush1.bf16.msra.mxu1 %v6052_v22  ;;  %v6110_v1 = vld [vmem:[%s9223_s1 + $0x9b4] ss:$40 sps:$4 sm:$0xff]   ;;  %v6113_v3 = vld [vmem:[%s9223_s1 + $0x9b0] ss:$40 sps:$4 sm:$0xff]   ;;  %v6114_v8 = vld [vmem:[%s9223_s1 + $0xa00] ss:$40 sps:$4 sm:$0xff]  }
  0x18   :  { %3926 = vmatpush1.bf16.msra.mxu0 %v6053_v23  ;;  %3886 = vmatprep.subr.bf16.mxu1 %v6054_v24  ;;  %v20_v6 = vld [vmem:[%s9224_s0 + $0x10] sm:$0xff]  ;;  %v6125_v13 = vld [vmem:[%s9223_s1 + $0x5c] ss:$40 sps:$4 sm:$0xff]   ;;  %v6123_v15 = vld [vmem:[%s9223_s1 + $0x58] ss:$40 sps:$4 sm:$0xff]  }
  0x19   :  { %3927 = vmatprep.subr.bf16.mxu0 %v6056_v25  ;;  %v6119_v7 = vld [vmem:[%s9223_s1 + $0xc] ss:$40 sps:$4 sm:$0xff]   ;;  %v6117_v9 = vld [vmem:[%s9223_s1 + $0x8] ss:$40 sps:$4 sm:$0xff]   ;;  %v7279_v11 = vpack.c.bf16 %v20_v6, %v20_v6  ;;  %v6137_v21 = vld [vmem:[%s9223_s1 + $0xfc] ss:$40 sps:$4 sm:$0xff]  }
  0x1a   :  { %v6122_v12 = vld [vmem:[%s9223_s1 + $0xa54] ss:$40 sps:$4 sm:$0xff]   ;;  %v6120_v14 = vld [vmem:[%s9223_s1 + $0xa50] ss:$40 sps:$4 sm:$0xff]   ;;  %v6128_v16 = vld [vmem:[%s9223_s1 + $0xaa4] ss:$40 sps:$4 sm:$0xff]  }
  0x1b   :  { %3887 = vmatpush1.bf16.msra.mxu1 %v6058_v26  ;;  %v6131_v17 = vld [vmem:[%s9223_s1 + $0xac] ss:$40 sps:$4 sm:$0xff]   ;;  %v6126_v18 = vld [vmem:[%s9223_s1 + $0xaa0] ss:$40 sps:$4 sm:$0xff]   ;;  %v6132_v22 = vld [vmem:[%s9223_s1 + $0xaf0] ss:$40 sps:$4 sm:$0xff]  }
  0x1c   :  { %3928 = vmatpush1.bf16.msra.mxu0 %v6059_v27  ;;  %3888 = vmatprep.subr.bf16.mxu1 %v6060_v28  ;;  %v6129_v19 = vld [vmem:[%s9223_s1 + $0xa8] ss:$40 sps:$4 sm:$0xff]   ;;  %v6134_v20 = vld [vmem:[%s9223_s1 + $0xaf4] ss:$40 sps:$4 sm:$0xff]   ;;  %v6135_v23 = vld [vmem:[%s9223_s1 + $0xf8] ss:$40 sps:$4 sm:$0xff]  }
  0x1d   :  { %3929 = vmatprep.subr.bf16.mxu0 %v6062_v29  ;;  %v6140_v24 = vld [vmem:[%s9223_s1 + $0xb44] ss:$40 sps:$4 sm:$0xff]   ;;  %v6138_v26 = vld [vmem:[%s9223_s1 + $0xb40] ss:$40 sps:$4 sm:$0xff]   ;;  %v6146_v28 = vld [vmem:[%s9223_s1 + $0xb94] ss:$40 sps:$4 sm:$0xff]  }
  0x1e   :  { %v6143_v25 = vld [vmem:[%s9223_s1 + $0x14c] ss:$40 sps:$4 sm:$0xff]   ;;  %v6141_v27 = vld [vmem:[%s9223_s1 + $0x148] ss:$40 sps:$4 sm:$0xff]   ;;  %v6149_v29 = vld [vmem:[%s9223_s1 + $0x19c] ss:$40 sps:$4 sm:$0xff]  }
  0x1f   :  { %3889 = vmatpush1.bf16.msra.mxu1 %v6064_v30  ;;  %v6144_v30 = vld [vmem:[%s9223_s1 + $0xb90] ss:$40 sps:$4 sm:$0xff]   ;;  %v6170_v46 = vld [vmem:[%s9223_s1 + $0xcd4] ss:$40 sps:$4 sm:$0xff]   ;;  %v6198_v6 = vld [vmem:[%s9223_s1 + $0xe60] ss:$40 sps:$4 sm:$0xff]  }
  0x20   :  { %3930 = vmatpush1.bf16.msra.mxu0 %v6065_v31  ;;  %3890 = vmatprep.subr.bf16.mxu1 %v6066_v32  ;;  %v6147_v31 = vld [vmem:[%s9223_s1 + $0x198] ss:$40 sps:$4 sm:$0xff]   ;;  %v6152_v32 = vld [vmem:[%s9223_s1 + $0xbe4] ss:$40 sps:$4 sm:$0xff]  }
  0x21   :  { %3931 = vmatprep.subr.bf16.mxu0 %v6068_v33  ;;  %v6155_v33 = vld [vmem:[%s9223_s1 + $0x1ec] ss:$40 sps:$4 sm:$0xff]   ;;  %v6173_v48 = vld [vmem:[%s9223_s1 + $0x2dc] ss:$40 sps:$4 sm:$0xff]  }
  0x22   :  { %v6203_v5 = vld [vmem:[%s9223_s1 + $0x46c] ss:$40 sps:$4 sm:$0xff]  }
  0x23   :  { %3891 = vmatpush1.bf16.msra.mxu1 %v6070_v34  ;;  %v23_v34 = vld [vmem:[%s9224_s0 + $0x28] sm:$0xff] }
  0x24   :  { %3932 = vmatpush1.bf16.msra.mxu0 %v6071_v35  ;;  %3892 = vmatprep.subr.bf16.mxu1 %v6072_v36  ;;  %v6150_v35 = vld [vmem:[%s9223_s1 + $0xbe0] ss:$40 sps:$4 sm:$0xff]   ;;  %v7356_v36 = vpack.c.bf16 %v23_v34, %v23_v34  ;;  %v6236_v34 = vld [vmem:[%s9223_s1 + $0x1044] ss:$40 sps:$4 sm:$0xff]  }
  0x25   :  { %3933 = vmatprep.subr.bf16.mxu0 %v6074_v37  ;;  %v6153_v37 = vld [vmem:[%s9223_s1 + $0x1e8] ss:$40 sps:$4 sm:$0xff]  }
  0x27   :  { %3893 = vmatpush1.bf16.msra.mxu1 %v6076_v38  ;;  %v6158_v38 = vld [vmem:[%s9223_s1 + $0xc34] ss:$40 sps:$4 sm:$0xff]  }
  0x28   :  { %3934 = vmatpush1.bf16.msra.mxu0 %v6077_v39  ;;  %3894 = vmatprep.subr.bf16.mxu1 %v6078_v40  ;;  %v6161_v39 = vld [vmem:[%s9223_s1 + $0x23c] ss:$40 sps:$4 sm:$0xff]   ;;  %v6156_v40 = vld [vmem:[%s9223_s1 + $0xc30] ss:$40 sps:$4 sm:$0xff]  }
  0x29   :  { %3935 = vmatprep.subr.bf16.mxu0 %v6080_v41  ;;  %v6159_v41 = vld [vmem:[%s9223_s1 + $0x238] ss:$40 sps:$4 sm:$0xff]  }
  0x2b   :  { %3895 = vmatpush1.bf16.msra.mxu1 %v6082_v42  ;;  %v6164_v42 = vld [vmem:[%s9223_s1 + $0xc84] ss:$40 sps:$4 sm:$0xff]  }
  0x2c   :  { %3936 = vmatpush1.bf16.msra.mxu0 %v6083_v43  ;;  %3896 = vmatprep.subr.bf16.mxu1 %v6084_v44  ;;  %v6167_v43 = vld [vmem:[%s9223_s1 + $0x28c] ss:$40 sps:$4 sm:$0xff]   ;;  %v6162_v44 = vld [vmem:[%s9223_s1 + $0xc80] ss:$40 sps:$4 sm:$0xff]  }
  0x2d   :  { %3937 = vmatprep.subr.bf16.mxu0 %v6086_v45  ;;  %v6165_v45 = vld [vmem:[%s9223_s1 + $0x288] ss:$40 sps:$4 sm:$0xff]  }
  0x2f   :  { %3897 = vmatpush1.bf16.msra.mxu1 %v6088_v49  ;;  %v6168_v49 = vld [vmem:[%s9223_s1 + $0xcd0] ss:$40 sps:$4 sm:$0xff]  }
  0x30   :  { %3938 = vmatpush1.bf16.msra.mxu0 %v6089_v50  ;;  %3898 = vmatprep.subr.bf16.mxu1 %v6090_v52  ;;  %v6171_v50 = vld [vmem:[%s9223_s1 + $0x2d8] ss:$40 sps:$4 sm:$0xff]   ;;  %v6176_v52 = vld [vmem:[%s9223_s1 + $0xd24] ss:$40 sps:$4 sm:$0xff]  }
  0x31   :  { %3939 = vmatprep.subr.bf16.mxu0 %v6092_v53  ;;  %v6179_v53 = vld [vmem:[%s9223_s1 + $0x32c] ss:$40 sps:$4 sm:$0xff]  }
  0x33   :  { %3899 = vmatpush1.bf16.msra.mxu1 %v6094_v54  ;;  %v6174_v54 = vld [vmem:[%s9223_s1 + $0xd20] ss:$40 sps:$4 sm:$0xff]  }
  0x34   :  { %3940 = vmatpush1.bf16.msra.mxu0 %v6095_v55  ;;  %3900 = vmatprep.subr.bf16.mxu1 %v6096_v56  ;;  %v6177_v55 = vld [vmem:[%s9223_s1 + $0x328] ss:$40 sps:$4 sm:$0xff]   ;;  %v6182_v56 = vld [vmem:[%s9223_s1 + $0xd74] ss:$40 sps:$4 sm:$0xff]  }
  0x35   :  { %3941 = vmatprep.subr.bf16.mxu0 %v6098_v57  ;;  %v6185_v57 = vld [vmem:[%s9223_s1 + $0x37c] ss:$40 sps:$4 sm:$0xff]  }
  0x37   :  { %3901 = vmatpush1.bf16.msra.mxu1 %v6100_v58  ;;  %v6180_v58 = vld [vmem:[%s9223_s1 + $0xd70] ss:$40 sps:$4 sm:$0xff]  }
  0x38   :  { %3942 = vmatpush1.bf16.msra.mxu0 %v6101_v59  ;;  %3902 = vmatprep.subr.bf16.mxu1 %v6102_v60  ;;  %v6183_v59 = vld [vmem:[%s9223_s1 + $0x378] ss:$40 sps:$4 sm:$0xff]   ;;  %v6188_v60 = vld [vmem:[%s9223_s1 + $0xdc4] ss:$40 sps:$4 sm:$0xff]  }
  0x39   :  { %3943 = vmatprep.subr.bf16.mxu0 %v6104_v61  ;;  %v6191_v61 = vld [vmem:[%s9223_s1 + $0x3cc] ss:$40 sps:$4 sm:$0xff]  }
  0x3b   :  { %3903 = vmatpush1.bf16.msra.mxu1 %v6106_v62  ;;  %v6186_v62 = vld [vmem:[%s9223_s1 + $0xdc0] ss:$40 sps:$4 sm:$0xff]  }
  0x3c   :  { %3944 = vmatpush1.bf16.msra.mxu0 %v6107_v63  ;;  %3904 = vmatprep.subr.bf16.mxu1 %v6108_v0  ;;  %v6189_v63 = vld [vmem:[%s9223_s1 + $0x3c8] ss:$40 sps:$4 sm:$0xff]   ;;  %v6194_v0 = vld [vmem:[%s9223_s1 + $0xe14] ss:$40 sps:$4 sm:$0xff]  }
  0x3d   :  { %3945 = vmatprep.subr.bf16.mxu0 %v6110_v1  ;;  %v6197_v1 = vld [vmem:[%s9223_s1 + $0x41c] ss:$40 sps:$4 sm:$0xff]  }
  0x3f   :  { %3905 = vmatpush1.bf16.msra.mxu1 %v6112_v2  ;;  %v6192_v2 = vld [vmem:[%s9223_s1 + $0xe10] ss:$40 sps:$4 sm:$0xff]  }
  0x40   :  { %3946 = vmatpush1.bf16.msra.mxu0 %v6113_v3  ;;  %4038 = vmatprep.subr.bf16.mxu1 %v6119_v7  ;;  %v6195_v3 = vld [vmem:[%s9223_s1 + $0x418] ss:$40 sps:$4 sm:$0xff]   ;;  %v6201_v7 = vld [vmem:[%s9223_s1 + $0x468] ss:$40 sps:$4 sm:$0xff]  }
  0x41   :  { %3956 = vmatprep.subr.bf16.mxu0 %v6116_v4  ;;  %v6200_v4 = vld [vmem:[%s9223_s1 + $0xe64] ss:$40 sps:$4 sm:$0xff]  }
  0x42   :  { %3907 = vmatmul.mubr.bf16.vlgmr.msra.gmra.mrb[0].mxu1 %v7277_v10 }
  0x43   :  { %3948 = vmatmul.mubr.bf16.vlgmr.msra.gmra.mrb[0].mxu0 %v7279_v11  ;;  %4039 = vmatpush1.bf16.msra.mxu1 %v6117_v9  ;;  %v6209_v9 = vld [vmem:[%s9223_s1 + $0x4bc] ss:$40 sps:$4 sm:$0xff]  }
  0x44   :  { %3957 = vmatpush1.bf16.msra.mxu0 %v6114_v8  ;;  %4040 = vmatprep.subr.bf16.mxu1 %v6125_v13  ;;  %v6206_v8 = vld [vmem:[%s9223_s1 + $0xeb4] ss:$40 sps:$4 sm:$0xff]   ;;  %v6207_v13 = vld [vmem:[%s9223_s1 + $0x4b8] ss:$40 sps:$4 sm:$0xff]  }
  0x45   :  { %3958 = vmatprep.subr.bf16.mxu0 %v6122_v12  ;;  %4070 = vmatprep.mubr.bf16.mxu1 %v7196_v47  ;;  %v6204_v12 = vld [vmem:[%s9223_s1 + $0xeb0] ss:$40 sps:$4 sm:$0xff]  }
  0x46   :  { %3988 = vmatprep.mubr.bf16.mxu0 %v7356_v36 }
  0x47   :  { %4041 = vmatpush1.bf16.msra.mxu1 %v6123_v15  ;;  %v6212_v15 = vld [vmem:[%s9223_s1 + $0xf04] ss:$40 sps:$4 sm:$0xff]  }
  0x48   :  { %3959 = vmatpush1.bf16.msra.mxu0 %v6120_v14  ;;  %4042 = vmatprep.subr.bf16.mxu1 %v6131_v17  ;;  %v22_v14 = vld [vmem:[%s9224_s0 + $0x20] sm:$0xff] }
  0x49   :  { %3960 = vmatprep.subr.bf16.mxu0 %v6128_v16  ;;  %v6215_v16 = vld [vmem:[%s9223_s1 + $0x50c] ss:$40 sps:$4 sm:$0xff]   ;;  %v7479_v17 = vpack.c.bf16 %v22_v14, %v22_v14  ;;  %v6291_v14 = vld [vmem:[%s9223_s1 + $0x918] ss:$40 sps:$4 sm:$0xff]  }
  0x4b   :  { %4043 = vmatpush1.bf16.msra.mxu1 %v6129_v19  ;;  %v6213_v19 = vld [vmem:[%s9223_s1 + $0x508] ss:$40 sps:$4 sm:$0xff]  }
  0x4c   :  { %3961 = vmatpush1.bf16.msra.mxu0 %v6126_v18  ;;  %4044 = vmatprep.subr.bf16.mxu1 %v6137_v21  ;;  %v6210_v18 = vld [vmem:[%s9223_s1 + $0xf00] ss:$40 sps:$4 sm:$0xff]   ;;  %v6221_v21 = vld [vmem:[%s9223_s1 + $0x55c] ss:$40 sps:$4 sm:$0xff]  }
  0x4d   :  { %3962 = vmatprep.subr.bf16.mxu0 %v6134_v20  ;;  %v6218_v20 = vld [vmem:[%s9223_s1 + $0xf54] ss:$40 sps:$4 sm:$0xff]  }
  0x4f   :  { %4045 = vmatpush1.bf16.msra.mxu1 %v6135_v23  ;;  %v6216_v23 = vld [vmem:[%s9223_s1 + $0xf50] ss:$40 sps:$4 sm:$0xff]  }
  0x50   :  { %3963 = vmatpush1.bf16.msra.mxu0 %v6132_v22  ;;  %4046 = vmatprep.subr.bf16.mxu1 %v6143_v25  ;;  %v25_v22 = vld [vmem:[%s9224_s0 + $0x38] sm:$0xff] }
  0x51   :  { %3964 = vmatprep.subr.bf16.mxu0 %v6140_v24  ;;  %v6219_v24 = vld [vmem:[%s9223_s1 + $0x558] ss:$40 sps:$4 sm:$0xff]   ;;  %v7504_v25 = vpack.c.bf16 %v25_v22, %v25_v22 }
  0x52   :  { %v6300_v22 = vld [vmem:[%s9223_s1 + $0x13b0] ss:$40 sps:$4 sm:$0xff]  }
  0x53   :  { %4047 = vmatpush1.bf16.msra.mxu1 %v6141_v27  ;;  %v6227_v27 = vld [vmem:[%s9223_s1 + $0x5ac] ss:$40 sps:$4 sm:$0xff]  }
  0x54   :  { %3965 = vmatpush1.bf16.msra.mxu0 %v6138_v26  ;;  %4048 = vmatprep.subr.bf16.mxu1 %v6149_v29  ;;  %v6224_v26 = vld [vmem:[%s9223_s1 + $0xfa4] ss:$40 sps:$4 sm:$0xff]   ;;  %v6225_v29 = vld [vmem:[%s9223_s1 + $0x5a8] ss:$40 sps:$4 sm:$0xff]  }
  0x55   :  { %3966 = vmatprep.subr.bf16.mxu0 %v6146_v28  ;;  %v6222_v28 = vld [vmem:[%s9223_s1 + $0xfa0] ss:$40 sps:$4 sm:$0xff]  }
  0x57   :  { %4049 = vmatpush1.bf16.msra.mxu1 %v6147_v31  ;;  %v6233_v31 = vld [vmem:[%s9223_s1 + $0x5fc] ss:$40 sps:$4 sm:$0xff]  }
  0x58   :  { %3967 = vmatpush1.bf16.msra.mxu0 %v6144_v30  ;;  %4050 = vmatprep.subr.bf16.mxu1 %v6155_v33  ;;  %v6230_v30 = vld [vmem:[%s9223_s1 + $0xff4] ss:$40 sps:$4 sm:$0xff]   ;;  %v6231_v33 = vld [vmem:[%s9223_s1 + $0x5f8] ss:$40 sps:$4 sm:$0xff]  }
  0x59   :  { %3968 = vmatprep.subr.bf16.mxu0 %v6152_v32  ;;  %v6228_v32 = vld [vmem:[%s9223_s1 + $0xff0] ss:$40 sps:$4 sm:$0xff]  }
  0x5b   :  { %4051 = vmatpush1.bf16.msra.mxu1 %v6153_v37  ;;  %v6234_v37 = vld [vmem:[%s9223_s1 + $0x1040] ss:$40 sps:$4 sm:$0xff]  }
  0x5c   :  { %3969 = vmatpush1.bf16.msra.mxu0 %v6150_v35  ;;  %4052 = vmatprep.subr.bf16.mxu1 %v6161_v39  ;;  %v6239_v35 = vld [vmem:[%s9223_s1 + $0x64c] ss:$40 sps:$4 sm:$0xff]  }
  0x5d   :  { %3970 = vmatprep.subr.bf16.mxu0 %v6158_v38  ;;  %v6237_v38 = vld [vmem:[%s9223_s1 + $0x648] ss:$40 sps:$4 sm:$0xff]   ;;  %v6242_v39 = vld [vmem:[%s9223_s1 + $0x1094] ss:$40 sps:$4 sm:$0xff]  }
  0x5f   :  { %4053 = vmatpush1.bf16.msra.mxu1 %v6159_v41  ;;  %v6240_v41 = vld [vmem:[%s9223_s1 + $0x1090] ss:$40 sps:$4 sm:$0xff]  }
  0x60   :  { %3971 = vmatpush1.bf16.msra.mxu0 %v6156_v40  ;;  %4054 = vmatprep.subr.bf16.mxu1 %v6167_v43  ;;  %v6245_v40 = vld [vmem:[%s9223_s1 + $0x69c] ss:$40 sps:$4 sm:$0xff]  }
  0x61   :  { %3972 = vmatprep.subr.bf16.mxu0 %v6164_v42  ;;  %v6243_v42 = vld [vmem:[%s9223_s1 + $0x698] ss:$40 sps:$4 sm:$0xff]   ;;  %v6248_v43 = vld [vmem:[%s9223_s1 + $0x10e4] ss:$40 sps:$4 sm:$0xff]  }
  0x63   :  { %4055 = vmatpush1.bf16.msra.mxu1 %v6165_v45  ;;  %v6246_v45 = vld [vmem:[%s9223_s1 + $0x10e0] ss:$40 sps:$4 sm:$0xff]  }
  0x64   :  { %3973 = vmatpush1.bf16.msra.mxu0 %v6162_v44  ;;  %4056 = vmatprep.subr.bf16.mxu1 %v6173_v48  ;;  %v6251_v44 = vld [vmem:[%s9223_s1 + $0x6ec] ss:$40 sps:$4 sm:$0xff]  }
  0x65   :  { %3974 = vmatprep.subr.bf16.mxu0 %v6170_v46  ;;  %v6249_v46 = vld [vmem:[%s9223_s1 + $0x6e8] ss:$40 sps:$4 sm:$0xff]   ;;  %v6254_v48 = vld [vmem:[%s9223_s1 + $0x1134] ss:$40 sps:$4 sm:$0xff]  }
  0x67   :  { %4057 = vmatpush1.bf16.msra.mxu1 %v6171_v50  ;;  %v6252_v50 = vld [vmem:[%s9223_s1 + $0x1130] ss:$40 sps:$4 sm:$0xff]  }
  0x68   :  { %3975 = vmatpush1.bf16.msra.mxu0 %v6168_v49  ;;  %4058 = vmatprep.subr.bf16.mxu1 %v6179_v53  ;;  %v6257_v49 = vld [vmem:[%s9223_s1 + $0x73c] ss:$40 sps:$4 sm:$0xff]  }
  0x69   :  { %3976 = vmatprep.subr.bf16.mxu0 %v6176_v52  ;;  %v6255_v52 = vld [vmem:[%s9223_s1 + $0x738] ss:$40 sps:$4 sm:$0xff]   ;;  %v6260_v53 = vld [vmem:[%s9223_s1 + $0x1184] ss:$40 sps:$4 sm:$0xff]  }
  0x6b   :  { %4059 = vmatpush1.bf16.msra.mxu1 %v6177_v55  ;;  %v6258_v55 = vld [vmem:[%s9223_s1 + $0x1180] ss:$40 sps:$4 sm:$0xff]  }
  0x6c   :  { %3977 = vmatpush1.bf16.msra.mxu0 %v6174_v54  ;;  %4060 = vmatprep.subr.bf16.mxu1 %v6185_v57  ;;  %v6263_v54 = vld [vmem:[%s9223_s1 + $0x78c] ss:$40 sps:$4 sm:$0xff]  }
  0x6d   :  { %3978 = vmatprep.subr.bf16.mxu0 %v6182_v56  ;;  %v6261_v56 = vld [vmem:[%s9223_s1 + $0x788] ss:$40 sps:$4 sm:$0xff]   ;;  %v6266_v57 = vld [vmem:[%s9223_s1 + $0x11d4] ss:$40 sps:$4 sm:$0xff]  }
  0x6f   :  { %4061 = vmatpush1.bf16.msra.mxu1 %v6183_v59  ;;  %v6264_v59 = vld [vmem:[%s9223_s1 + $0x11d0] ss:$40 sps:$4 sm:$0xff]  }
  0x70   :  { %3979 = vmatpush1.bf16.msra.mxu0 %v6180_v58  ;;  %4062 = vmatprep.subr.bf16.mxu1 %v6191_v61  ;;  %v6269_v58 = vld [vmem:[%s9223_s1 + $0x7dc] ss:$40 sps:$4 sm:$0xff]  }
  0x71   :  { %3980 = vmatprep.subr.bf16.mxu0 %v6188_v60  ;;  %v6267_v60 = vld [vmem:[%s9223_s1 + $0x7d8] ss:$40 sps:$4 sm:$0xff]   ;;  %v6272_v61 = vld [vmem:[%s9223_s1 + $0x1224] ss:$40 sps:$4 sm:$0xff]  }
  0x73   :  { %4063 = vmatpush1.bf16.msra.mxu1 %v6189_v63  ;;  %v6270_v63 = vld [vmem:[%s9223_s1 + $0x1220] ss:$40 sps:$4 sm:$0xff]  }
  0x74   :  { %3981 = vmatpush1.bf16.msra.mxu0 %v6186_v62  ;;  %4064 = vmatprep.subr.bf16.mxu1 %v6197_v1  ;;  %v6275_v62 = vld [vmem:[%s9223_s1 + $0x82c] ss:$40 sps:$4 sm:$0xff]  }
  0x75   :  { %3982 = vmatprep.subr.bf16.mxu0 %v6194_v0  ;;  %v6273_v0 = vld [vmem:[%s9223_s1 + $0x828] ss:$40 sps:$4 sm:$0xff]   ;;  %v6278_v1 = vld [vmem:[%s9223_s1 + $0x1274] ss:$40 sps:$4 sm:$0xff]  }
  0x77   :  { %4065 = vmatpush1.bf16.msra.mxu1 %v6195_v3  ;;  %v6276_v3 = vld [vmem:[%s9223_s1 + $0x1270] ss:$40 sps:$4 sm:$0xff]  }
  0x78   :  { %3983 = vmatpush1.bf16.msra.mxu0 %v6192_v2  ;;  %4066 = vmatprep.subr.bf16.mxu1 %v6203_v5  ;;  %v6281_v2 = vld [vmem:[%s9223_s1 + $0x87c] ss:$40 sps:$4 sm:$0xff]  }
  0x79   :  { %3984 = vmatprep.subr.bf16.mxu0 %v6200_v4  ;;  %v6279_v4 = vld [vmem:[%s9223_s1 + $0x878] ss:$40 sps:$4 sm:$0xff]   ;;  %v6284_v5 = vld [vmem:[%s9223_s1 + $0x12c4] ss:$40 sps:$4 sm:$0xff]  }
  0x7b   :  { %4067 = vmatpush1.bf16.msra.mxu1 %v6201_v7  ;;  %v6282_v7 = vld [vmem:[%s9223_s1 + $0x12c0] ss:$40 sps:$4 sm:$0xff]  }
  0x7c   :  { %3985 = vmatpush1.bf16.msra.mxu0 %v6198_v6  ;;  %4068 = vmatprep.subr.bf16.mxu1 %v6209_v9  ;;  %v6287_v6 = vld [vmem:[%s9223_s1 + $0x8cc] ss:$40 sps:$4 sm:$0xff]  }
  0x7d   :  { %3986 = vmatprep.subr.bf16.mxu0 %v6206_v8  ;;  %v6285_v8 = vld [vmem:[%s9223_s1 + $0x8c8] ss:$40 sps:$4 sm:$0xff]   ;;  %v6290_v9 = vld [vmem:[%s9223_s1 + $0x1314] ss:$40 sps:$4 sm:$0xff]  }
  0x7f   :  { %4069 = vmatpush1.bf16.msra.mxu1 %v6207_v13  ;;  %v6288_v13 = vld [vmem:[%s9223_s1 + $0x1310] ss:$40 sps:$4 sm:$0xff]  }
  0x80   :  { %3987 = vmatpush1.bf16.msra.mxu0 %v6204_v12  ;;  %4079 = vmatprep.subr.bf16.mxu1 %v6215_v16  ;;  %v6293_v12 = vld [vmem:[%s9223_s1 + $0x91c] ss:$40 sps:$4 sm:$0xff]   ;;  %v6299_v16 = vld [vmem:[%s9223_s1 + $0x96c] ss:$40 sps:$4 sm:$0xff]  }
  0x81   :  { %3997 = vmatprep.subr.bf16.mxu0 %v6212_v15  ;;  %v6296_v15 = vld [vmem:[%s9223_s1 + $0x1364] ss:$40 sps:$4 sm:$0xff]  }
  0x82   :  { %4071 = vmatmul.mubr.bf16.vlgmr.msra.gmra.mrb[4].mxu1 %v7277_v10 }
  0x83   :  { %3989 = vmatmul.mubr.bf16.vlgmr.msra.gmra.mrb[0].mxu0 %v7479_v17  ;;  %4080 = vmatpush1.bf16.msra.mxu1 %v6213_v19  ;;  %v6297_v19 = vld [vmem:[%s9223_s1 + $0x968] ss:$40 sps:$4 sm:$0xff]  }
  0x84   :  { %3998 = vmatpush1.bf16.msra.mxu0 %v6210_v18  ;;  %4081 = vmatprep.subr.bf16.mxu1 %v6221_v21  ;;  %v6294_v18 = vld [vmem:[%s9223_s1 + $0x1360] ss:$40 sps:$4 sm:$0xff]   ;;  %v6305_v21 = vld [vmem:[%s9223_s1 + $0x9bc] ss:$40 sps:$4 sm:$0xff]  }
  0x85   :  { %3999 = vmatprep.subr.bf16.mxu0 %v6218_v20  ;;  %4029 = vmatprep.mubr.bf16.mxu0 %v7504_v25  ;;  %v6302_v20 = vld [vmem:[%s9223_s1 + $0x13b4] ss:$40 sps:$4 sm:$0xff]  }
  0x86   :  { %4111 = vmatprep.mubr.bf16.mxu1 %v7207_v51 }
  0x87   :  { %4082 = vmatpush1.bf16.msra.mxu1 %v6219_v24  ;;  %v24_v24 = vld [vmem:[%s9224_s0 + $0x30] sm:$0xff] }
  0x88   :  { %4000 = vmatpush1.bf16.msra.mxu0 %v6216_v23  ;;  %4083 = vmatprep.subr.bf16.mxu1 %v6227_v27  ;;  %v6303_v23 = vld [vmem:[%s9223_s1 + $0x9b8] ss:$40 sps:$4 sm:$0xff]   ;;  %v6311_v27 = vld [vmem:[%s9223_s1 + $0x14] ss:$40 sps:$4 sm:$0xff]  }
  0x89   :  { %4001 = vmatprep.subr.bf16.mxu0 %v6224_v26  ;;  %v6308_v26 = vld [vmem:[%s9223_s1 + $0xa0c] ss:$40 sps:$4 sm:$0xff]  }
  0x8b   :  { %4084 = vmatpush1.bf16.msra.mxu1 %v6225_v29  ;;  %v6306_v29 = vld [vmem:[%s9223_s1 + $0xa08] ss:$40 sps:$4 sm:$0xff]  }
  0x8c   :  { %4002 = vmatpush1.bf16.msra.mxu0 %v6222_v28  ;;  %4085 = vmatprep.subr.bf16.mxu1 %v6233_v31  ;;  %v7685_v28 = vpack.c.bf16 %v24_v24, %v24_v24  ;;  %v6314_v31 = vld [vmem:[%s9223_s1 + $0xa5c] ss:$40 sps:$4 sm:$0xff]   ;;  %v6387_v24 = vld [vmem:[%s9223_s1 + $0x420] ss:$40 sps:$4 sm:$0xff]  }
  0x8d   :  { %4003 = vmatprep.subr.bf16.mxu0 %v6230_v30  ;;  %v6309_v30 = vld [vmem:[%s9223_s1 + $0x10] ss:$40 sps:$4 sm:$0xff]  }
  0x8f   :  { %4086 = vmatpush1.bf16.msra.mxu1 %v6231_v33  ;;  %v6312_v33 = vld [vmem:[%s9223_s1 + $0xa58] ss:$40 sps:$4 sm:$0xff]  }
  0x90   :  { %4004 = vmatpush1.bf16.msra.mxu0 %v6228_v32  ;;  %4087 = vmatprep.subr.bf16.mxu1 %v6239_v35  ;;  %v6317_v32 = vld [vmem:[%s9223_s1 + $0x64] ss:$40 sps:$4 sm:$0xff]  }
  0x91   :  { %4005 = vmatprep.subr.bf16.mxu0 %v6236_v34  ;;  %v6315_v34 = vld [vmem:[%s9223_s1 + $0x60] ss:$40 sps:$4 sm:$0xff]   ;;  %v6320_v35 = vld [vmem:[%s9223_s1 + $0xaac] ss:$40 sps:$4 sm:$0xff]  }
  0x93   :  { %4088 = vmatpush1.bf16.msra.mxu1 %v6237_v38  ;;  %v6318_v38 = vld [vmem:[%s9223_s1 + $0xaa8] ss:$40 sps:$4 sm:$0xff]  }
  0x94   :  { %4006 = vmatpush1.bf16.msra.mxu0 %v6234_v37  ;;  %4089 = vmatprep.subr.bf16.mxu1 %v6245_v40  ;;  %v6323_v37 = vld [vmem:[%s9223_s1 + $0xb4] ss:$40 sps:$4 sm:$0xff]  }
  0x95   :  { %4007 = vmatprep.subr.bf16.mxu0 %v6242_v39  ;;  %v6321_v39 = vld [vmem:[%s9223_s1 + $0xb0] ss:$40 sps:$4 sm:$0xff]   ;;  %v6326_v40 = vld [vmem:[%s9223_s1 + $0xafc] ss:$40 sps:$4 sm:$0xff]  }
  0x97   :  { %4090 = vmatpush1.bf16.msra.mxu1 %v6243_v42  ;;  %v6324_v42 = vld [vmem:[%s9223_s1 + $0xaf8] ss:$40 sps:$4 sm:$0xff]  }
  0x98   :  { %4008 = vmatpush1.bf16.msra.mxu0 %v6240_v41  ;;  %4091 = vmatprep.subr.bf16.mxu1 %v6251_v44  ;;  %v6329_v41 = vld [vmem:[%s9223_s1 + $0x104] ss:$40 sps:$4 sm:$0xff]  }
  0x99   :  { %4009 = vmatprep.subr.bf16.mxu0 %v6248_v43  ;;  %v6327_v43 = vld [vmem:[%s9223_s1 + $0x100] ss:$40 sps:$4 sm:$0xff]   ;;  %v6332_v44 = vld [vmem:[%s9223_s1 + $0xb4c] ss:$40 sps:$4 sm:$0xff]  }
  0x9b   :  { %4092 = vmatpush1.bf16.msra.mxu1 %v6249_v46  ;;  %v6330_v46 = vld [vmem:[%s9223_s1 + $0xb48] ss:$40 sps:$4 sm:$0xff]  }
  0x9c   :  { %4010 = vmatpush1.bf16.msra.mxu0 %v6246_v45  ;;  %4093 = vmatprep.subr.bf16.mxu1 %v6257_v49  ;;  %v6335_v45 = vld [vmem:[%s9223_s1 + $0x154] ss:$40 sps:$4 sm:$0xff]  }
  0x9d   :  { %4011 = vmatprep.subr.bf16.mxu0 %v6254_v48  ;;  %v6333_v48 = vld [vmem:[%s9223_s1 + $0x150] ss:$40 sps:$4 sm:$0xff]   ;;  %v6338_v49 = vld [vmem:[%s9223_s1 + $0xb9c] ss:$40 sps:$4 sm:$0xff]  }
  0x9f   :  { %4094 = vmatpush1.bf16.msra.mxu1 %v6255_v52  ;;  %v6336_v52 = vld [vmem:[%s9223_s1 + $0xb98] ss:$40 sps:$4 sm:$0xff]  }
  0xa0   :  { %4012 = vmatpush1.bf16.msra.mxu0 %v6252_v50  ;;  %4095 = vmatprep.subr.bf16.mxu1 %v6263_v54  ;;  %v6341_v50 = vld [vmem:[%s9223_s1 + $0x1a4] ss:$40 sps:$4 sm:$0xff]  }
  0xa1   :  { %4013 = vmatprep.subr.bf16.mxu0 %v6260_v53  ;;  %v6339_v53 = vld [vmem:[%s9223_s1 + $0x1a0] ss:$40 sps:$4 sm:$0xff]   ;;  %v6344_v54 = vld [vmem:[%s9223_s1 + $0xbec] ss:$40 sps:$4 sm:$0xff]  }
  0xa3   :  { %4096 = vmatpush1.bf16.msra.mxu1 %v6261_v56  ;;  %v6342_v56 = vld [vmem:[%s9223_s1 + $0xbe8] ss:$40 sps:$4 sm:$0xff]  }
  0xa4   :  { %4014 = vmatpush1.bf16.msra.mxu0 %v6258_v55  ;;  %4097 = vmatprep.subr.bf16.mxu1 %v6269_v58  ;;  %v6347_v55 = vld [vmem:[%s9223_s1 + $0x1f4] ss:$40 sps:$4 sm:$0xff]  }
  0xa5   :  { %4015 = vmatprep.subr.bf16.mxu0 %v6266_v57  ;;  %v6345_v57 = vld [vmem:[%s9223_s1 + $0x1f0] ss:$40 sps:$4 sm:$0xff]   ;;  %v6350_v58 = vld [vmem:[%s9223_s1 + $0xc3c] ss:$40 sps:$4 sm:$0xff]  }
  0xa7   :  { %4098 = vmatpush1.bf16.msra.mxu1 %v6267_v60  ;;  %v6348_v60 = vld [vmem:[%s9223_s1 + $0xc38] ss:$40 sps:$4 sm:$0xff]  }
  0xa8   :  { %4016 = vmatpush1.bf16.msra.mxu0 %v6264_v59  ;;  %4099 = vmatprep.subr.bf16.mxu1 %v6275_v62  ;;  %v6353_v59 = vld [vmem:[%s9223_s1 + $0x244] ss:$40 sps:$4 sm:$0xff]  }
  0xa9   :  { %4017 = vmatprep.subr.bf16.mxu0 %v6272_v61  ;;  %v6351_v61 = vld [vmem:[%s9223_s1 + $0x240] ss:$40 sps:$4 sm:$0xff]   ;;  %v6356_v62 = vld [vmem:[%s9223_s1 + $0xc8c] ss:$40 sps:$4 sm:$0xff]  }
  0xab   :  { %4100 = vmatpush1.bf16.msra.mxu1 %v6273_v0  ;;  %v6354_v0 = vld [vmem:[%s9223_s1 + $0xc88] ss:$40 sps:$4 sm:$0xff]  }
  0xac   :  { %4018 = vmatpush1.bf16.msra.mxu0 %v6270_v63  ;;  %4101 = vmatprep.subr.bf16.mxu1 %v6281_v2  ;;  %v6359_v63 = vld [vmem:[%s9223_s1 + $0x294] ss:$40 sps:$4 sm:$0xff]  }
  0xad   :  { %4019 = vmatprep.subr.bf16.mxu0 %v6278_v1  ;;  %v6357_v1 = vld [vmem:[%s9223_s1 + $0x290] ss:$40 sps:$4 sm:$0xff]   ;;  %v6362_v2 = vld [vmem:[%s9223_s1 + $0xcdc] ss:$40 sps:$4 sm:$0xff]  }
  0xaf   :  { %4102 = vmatpush1.bf16.msra.mxu1 %v6279_v4  ;;  %v6360_v4 = vld [vmem:[%s9223_s1 + $0xcd8] ss:$40 sps:$4 sm:$0xff]  }
  0xb0   :  { %4020 = vmatpush1.bf16.msra.mxu0 %v6276_v3  ;;  %4103 = vmatprep.subr.bf16.mxu1 %v6287_v6  ;;  %v6365_v3 = vld [vmem:[%s9223_s1 + $0x2e4] ss:$40 sps:$4 sm:$0xff]  }
  0xb1   :  { %4021 = vmatprep.subr.bf16.mxu0 %v6284_v5  ;;  %v6363_v5 = vld [vmem:[%s9223_s1 + $0x2e0] ss:$40 sps:$4 sm:$0xff]   ;;  %v6368_v6 = vld [vmem:[%s9223_s1 + $0xd2c] ss:$40 sps:$4 sm:$0xff]  }
  0xb3   :  { %4104 = vmatpush1.bf16.msra.mxu1 %v6285_v8  ;;  %v6366_v8 = vld [vmem:[%s9223_s1 + $0xd28] ss:$40 sps:$4 sm:$0xff]  }
  0xb4   :  { %4022 = vmatpush1.bf16.msra.mxu0 %v6282_v7  ;;  %4105 = vmatprep.subr.bf16.mxu1 %v6293_v12  ;;  %v6371_v7 = vld [vmem:[%s9223_s1 + $0x334] ss:$40 sps:$4 sm:$0xff]  }
  0xb5   :  { %4023 = vmatprep.subr.bf16.mxu0 %v6290_v9  ;;  %v6369_v9 = vld [vmem:[%s9223_s1 + $0x330] ss:$40 sps:$4 sm:$0xff]   ;;  %v6374_v12 = vld [vmem:[%s9223_s1 + $0xd7c] ss:$40 sps:$4 sm:$0xff]  }
  0xb7   :  { %4106 = vmatpush1.bf16.msra.mxu1 %v6291_v14  ;;  %v6372_v14 = vld [vmem:[%s9223_s1 + $0xd78] ss:$40 sps:$4 sm:$0xff]  }
  0xb8   :  { %4024 = vmatpush1.bf16.msra.mxu0 %v6288_v13  ;;  %4107 = vmatprep.subr.bf16.mxu1 %v6299_v16  ;;  %v6377_v13 = vld [vmem:[%s9223_s1 + $0x384] ss:$40 sps:$4 sm:$0xff]  }
  0xb9   :  { %4025 = vmatprep.subr.bf16.mxu0 %v6296_v15  ;;  %v6375_v15 = vld [vmem:[%s9223_s1 + $0x380] ss:$40 sps:$4 sm:$0xff]   ;;  %v6380_v16 = vld [vmem:[%s9223_s1 + $0xdcc] ss:$40 sps:$4 sm:$0xff]  }
  0xbb   :  { %4108 = vmatpush1.bf16.msra.mxu1 %v6297_v19  ;;  %v6378_v19 = vld [vmem:[%s9223_s1 + $0xdc8] ss:$40 sps:$4 sm:$0xff]  }
  0xbc   :  { %4026 = vmatpush1.bf16.msra.mxu0 %v6294_v18  ;;  %4109 = vmatprep.subr.bf16.mxu1 %v6305_v21  ;;  %v6383_v18 = vld [vmem:[%s9223_s1 + $0x3d4] ss:$40 sps:$4 sm:$0xff]  }
  0xbd   :  { %4027 = vmatprep.subr.bf16.mxu0 %v6302_v20  ;;  %v6381_v20 = vld [vmem:[%s9223_s1 + $0x3d0] ss:$40 sps:$4 sm:$0xff]   ;;  %v6386_v21 = vld [vmem:[%s9223_s1 + $0xe1c] ss:$40 sps:$4 sm:$0xff]  }
  0xbf   :  { %4110 = vmatpush1.bf16.msra.mxu1 %v6303_v23  ;;  %v6384_v23 = vld [vmem:[%s9223_s1 + $0xe18] ss:$40 sps:$4 sm:$0xff]  }
  0xc0   :  { %4028 = vmatpush1.bf16.msra.mxu0 %v6300_v22  ;;  %4120 = vmatprep.subr.bf16.mxu1 %v6308_v26  ;;  %v6389_v22 = vld [vmem:[%s9223_s1 + $0x424] ss:$40 sps:$4 sm:$0xff]  }
  0xc1   :  { %4202 = vmatprep.subr.bf16.mxu0 %v6311_v27  ;;  %v6392_v26 = vld [vmem:[%s9223_s1 + $0xe6c] ss:$40 sps:$4 sm:$0xff]  }
  0xc2   :  { %4112 = vmatmul.mubr.bf16.vlgmr.msra.gmra.mrb[4].mxu1 %v7279_v11  ;;  %v6395_v27 = vld [vmem:[%s9223_s1 + $0x474] ss:$40 sps:$4 sm:$0xff]  }
  0xc3   :  { %4030 = vmatmul.mubr.bf16.vlgmr.msra.gmra.mrb[0].mxu0 %v7685_v28  ;;  %4121 = vmatpush1.bf16.msra.mxu1 %v6306_v29  ;;  %v6390_v29 = vld [vmem:[%s9223_s1 + $0xe68] ss:$40 sps:$4 sm:$0xff]  }
  0xc4   :  { %4203 = vmatpush1.bf16.msra.mxu0 %v6309_v30  ;;  %4122 = vmatprep.subr.bf16.mxu1 %v6314_v31  ;;  %v6393_v30 = vld [vmem:[%s9223_s1 + $0x470] ss:$40 sps:$4 sm:$0xff]   ;;  %v6398_v31 = vld [vmem:[%s9223_s1 + $0xebc] ss:$40 sps:$4 sm:$0xff]  }
  0xc5   :  { %4204 = vmatprep.subr.bf16.mxu0 %v6317_v32  ;;  %4152 = vmatprep.mubr.bf16.mxu1 %v7356_v36  ;;  %v6401_v32 = vld [vmem:[%s9223_s1 + $0x4c4] ss:$40 sps:$4 sm:$0xff]  }
  0xc6   :  { %4234 = vmatprep.mubr.bf16.mxu0 %v7196_v47 }
  0xc7   :  { %4123 = vmatpush1.bf16.msra.mxu1 %v6312_v33  ;;  %v6396_v33 = vld [vmem:[%s9223_s1 + $0xeb8] ss:$40 sps:$4 sm:$0xff]  }
  0xc8   :  { %4205 = vmatpush1.bf16.msra.mxu0 %v6315_v34  ;;  %4124 = vmatprep.subr.bf16.mxu1 %v6320_v35  ;;  %v6399_v34 = vld [vmem:[%s9223_s1 + $0x4c0] ss:$40 sps:$4 sm:$0xff]   ;;  %v6404_v35 = vld [vmem:[%s9223_s1 + $0xf0c] ss:$40 sps:$4 sm:$0xff]  }
  0xc9   :  { %4206 = vmatprep.subr.bf16.mxu0 %v6323_v37  ;;  %v6407_v37 = vld [vmem:[%s9223_s1 + $0x514] ss:$40 sps:$4 sm:$0xff]  }
  0xcb   :  { %4125 = vmatpush1.bf16.msra.mxu1 %v6318_v38  ;;  %v6402_v38 = vld [vmem:[%s9223_s1 + $0xf08] ss:$40 sps:$4 sm:$0xff]  }
  0xcc   :  { %4207 = vmatpush1.bf16.msra.mxu0 %v6321_v39  ;;  %4126 = vmatprep.subr.bf16.mxu1 %v6326_v40  ;;  %v6405_v39 = vld [vmem:[%s9223_s1 + $0x510] ss:$40 sps:$4 sm:$0xff]   ;;  %v6410_v40 = vld [vmem:[%s9223_s1 + $0xf5c] ss:$40 sps:$4 sm:$0xff]  }
  0xcd   :  { %4208 = vmatprep.subr.bf16.mxu0 %v6329_v41  ;;  %v6413_v41 = vld [vmem:[%s9223_s1 + $0x564] ss:$40 sps:$4 sm:$0xff]  }
  0xcf   :  { %4127 = vmatpush1.bf16.msra.mxu1 %v6324_v42  ;;  %v6408_v42 = vld [vmem:[%s9223_s1 + $0xf58] ss:$40 sps:$4 sm:$0xff]  }
  0xd0   :  { %4209 = vmatpush1.bf16.msra.mxu0 %v6327_v43  ;;  %4128 = vmatprep.subr.bf16.mxu1 %v6332_v44  ;;  %v6411_v43 = vld [vmem:[%s9223_s1 + $0x560] ss:$40 sps:$4 sm:$0xff]   ;;  %v6416_v44 = vld [vmem:[%s9223_s1 + $0xfac] ss:$40 sps:$4 sm:$0xff]  }
  0xd1   :  { %4210 = vmatprep.subr.bf16.mxu0 %v6335_v45  ;;  %v6419_v45 = vld [vmem:[%s9223_s1 + $0x5b4] ss:$40 sps:$4 sm:$0xff]  }
  0xd3   :  { %4129 = vmatpush1.bf16.msra.mxu1 %v6330_v46  ;;  %v6414_v46 = vld [vmem:[%s9223_s1 + $0xfa8] ss:$40 sps:$4 sm:$0xff]  }
  0xd4   :  { %4211 = vmatpush1.bf16.msra.mxu0 %v6333_v48  ;;  %4130 = vmatprep.subr.bf16.mxu1 %v6338_v49  ;;  %v6417_v48 = vld [vmem:[%s9223_s1 + $0x5b0] ss:$40 sps:$4 sm:$0xff]   ;;  %v6422_v49 = vld [vmem:[%s9223_s1 + $0xffc] ss:$40 sps:$4 sm:$0xff]  }
  0xd5   :  { %4212 = vmatprep.subr.bf16.mxu0 %v6341_v50  ;;  %v6425_v50 = vld [vmem:[%s9223_s1 + $0x604] ss:$40 sps:$4 sm:$0xff]  }
  0xd7   :  { %4131 = vmatpush1.bf16.msra.mxu1 %v6336_v52  ;;  %v6420_v52 = vld [vmem:[%s9223_s1 + $0xff8] ss:$40 sps:$4 sm:$0xff]  }
  0xd8   :  { %4213 = vmatpush1.bf16.msra.mxu0 %v6339_v53  ;;  %4132 = vmatprep.subr.bf16.mxu1 %v6344_v54  ;;  %v6423_v53 = vld [vmem:[%s9223_s1 + $0x600] ss:$40 sps:$4 sm:$0xff]   ;;  %v6428_v54 = vld [vmem:[%s9223_s1 + $0x104c] ss:$40 sps:$4 sm:$0xff]  }
  0xd9   :  { %4214 = vmatprep.subr.bf16.mxu0 %v6347_v55  ;;  %v6431_v55 = vld [vmem:[%s9223_s1 + $0x654] ss:$40 sps:$4 sm:$0xff]  }
  0xdb   :  { %4133 = vmatpush1.bf16.msra.mxu1 %v6342_v56  ;;  %v6426_v56 = vld [vmem:[%s9223_s1 + $0x1048] ss:$40 sps:$4 sm:$0xff]  }
  0xdc   :  { %4215 = vmatpush1.bf16.msra.mxu0 %v6345_v57  ;;  %4134 = vmatprep.subr.bf16.mxu1 %v6350_v58  ;;  %v6429_v57 = vld [vmem:[%s9223_s1 + $0x650] ss:$40 sps:$4 sm:$0xff]   ;;  %v6434_v58 = vld [vmem:[%s9223_s1 + $0x109c] ss:$40 sps:$4 sm:$0xff]  }
  0xdd   :  { %4216 = vmatprep.subr.bf16.mxu0 %v6353_v59  ;;  %v6437_v59 = vld [vmem:[%s9223_s1 + $0x6a4] ss:$40 sps:$4 sm:$0xff]  }
  0xdf   :  { %4135 = vmatpush1.bf16.msra.mxu1 %v6348_v60  ;;  %v6432_v60 = vld [vmem:[%s9223_s1 + $0x1098] ss:$40 sps:$4 sm:$0xff]  }
  0xe0   :  { %4217 = vmatpush1.bf16.msra.mxu0 %v6351_v61  ;;  %4136 = vmatprep.subr.bf16.mxu1 %v6356_v62  ;;  %v6435_v61 = vld [vmem:[%s9223_s1 + $0x6a0] ss:$40 sps:$4 sm:$0xff]   ;;  %v6440_v62 = vld [vmem:[%s9223_s1 + $0x10ec] ss:$40 sps:$4 sm:$0xff]  }
  0xe1   :  { %4218 = vmatprep.subr.bf16.mxu0 %v6359_v63  ;;  %v6443_v63 = vld [vmem:[%s9223_s1 + $0x6f4] ss:$40 sps:$4 sm:$0xff]  }
  0xe3   :  { %4137 = vmatpush1.bf16.msra.mxu1 %v6354_v0  ;;  %v6438_v0 = vld [vmem:[%s9223_s1 + $0x10e8] ss:$40 sps:$4 sm:$0xff]  }
  0xe4   :  { %4219 = vmatpush1.bf16.msra.mxu0 %v6357_v1  ;;  %4138 = vmatprep.subr.bf16.mxu1 %v6362_v2  ;;  %v6441_v1 = vld [vmem:[%s9223_s1 + $0x6f0] ss:$40 sps:$4 sm:$0xff]  }
  0xe5   :  { %4220 = vmatprep.subr.bf16.mxu0 %v6365_v3 }
  0xe7   :  { %4139 = vmatpush1.bf16.msra.mxu1 %v6360_v4 }
  0xe8   :  { %4221 = vmatpush1.bf16.msra.mxu0 %v6363_v5  ;;  %4140 = vmatprep.subr.bf16.mxu1 %v6368_v6  ;;  %v6446_v5 = vld [vmem:[%s9223_s1 + $0x113c] ss:$40 sps:$4 sm:$0xff]  }
  0xe9   :  { %4222 = vmatprep.subr.bf16.mxu0 %v6371_v7  ;;  %v6449_v6 = vld [vmem:[%s9223_s1 + $0x744] ss:$40 sps:$4 sm:$0xff]  }
  0xeb   :  { %4141 = vmatpush1.bf16.msra.mxu1 %v6366_v8  ;;  %v6444_v8 = vld [vmem:[%s9223_s1 + $0x1138] ss:$40 sps:$4 sm:$0xff]  }
  0xec   :  { %4223 = vmatpush1.bf16.msra.mxu0 %v6369_v9  ;;  %4142 = vmatprep.subr.bf16.mxu1 %v6374_v12  ;;  %v6447_v9 = vld [vmem:[%s9223_s1 + $0x740] ss:$40 sps:$4 sm:$0xff]   ;;  %v6452_v12 = vld [vmem:[%s9223_s1 + $0x118c] ss:$40 sps:$4 sm:$0xff]  }
  0xed   :  { %4224 = vmatprep.subr.bf16.mxu0 %v6377_v13  ;;  %v6455_v13 = vld [vmem:[%s9223_s1 + $0x794] ss:$40 sps:$4 sm:$0xff]  }
  0xef   :  { %4143 = vmatpush1.bf16.msra.mxu1 %v6372_v14  ;;  %v6450_v14 = vld [vmem:[%s9223_s1 + $0x1188] ss:$40 sps:$4 sm:$0xff]  }
  0xf0   :  { %4225 = vmatpush1.bf16.msra.mxu0 %v6375_v15  ;;  %4144 = vmatprep.subr.bf16.mxu1 %v6380_v16  ;;  %v6453_v15 = vld [vmem:[%s9223_s1 + $0x790] ss:$40 sps:$4 sm:$0xff]   ;;  %v6458_v16 = vld [vmem:[%s9223_s1 + $0x11dc] ss:$40 sps:$4 sm:$0xff]  }
  0xf1   :  { %4226 = vmatprep.subr.bf16.mxu0 %v6383_v18  ;;  %v6461_v18 = vld [vmem:[%s9223_s1 + $0x7e4] ss:$40 sps:$4 sm:$0xff]  }
  0xf3   :  { %4145 = vmatpush1.bf16.msra.mxu1 %v6378_v19  ;;  %v6456_v19 = vld [vmem:[%s9223_s1 + $0x11d8] ss:$40 sps:$4 sm:$0xff]  }
  0xf4   :  { %4227 = vmatpush1.bf16.msra.mxu0 %v6381_v20  ;;  %4146 = vmatprep.subr.bf16.mxu1 %v6386_v21  ;;  %v6459_v20 = vld [vmem:[%s9223_s1 + $0x7e0] ss:$40 sps:$4 sm:$0xff]   ;;  %v6464_v21 = vld [vmem:[%s9223_s1 + $0x122c] ss:$40 sps:$4 sm:$0xff]  }
  0xf5   :  { %4228 = vmatprep.subr.bf16.mxu0 %v6389_v22  ;;  %v6467_v22 = vld [vmem:[%s9223_s1 + $0x834] ss:$40 sps:$4 sm:$0xff]  }
  0xf7   :  { %4147 = vmatpush1.bf16.msra.mxu1 %v6384_v23  ;;  %v6462_v23 = vld [vmem:[%s9223_s1 + $0x1228] ss:$40 sps:$4 sm:$0xff]  }
  0xf8   :  { %4229 = vmatpush1.bf16.msra.mxu0 %v6387_v24  ;;  %4148 = vmatprep.subr.bf16.mxu1 %v6392_v26  ;;  %v6465_v24 = vld [vmem:[%s9223_s1 + $0x830] ss:$40 sps:$4 sm:$0xff]   ;;  %v6470_v26 = vld [vmem:[%s9223_s1 + $0x127c] ss:$40 sps:$4 sm:$0xff]  }
  0xf9   :  { %4230 = vmatprep.subr.bf16.mxu0 %v6395_v27  ;;  %v6473_v27 = vld [vmem:[%s9223_s1 + $0x884] ss:$40 sps:$4 sm:$0xff]  }
  0xfb   :  { %4149 = vmatpush1.bf16.msra.mxu1 %v6390_v29  ;;  %v6468_v29 = vld [vmem:[%s9223_s1 + $0x1278] ss:$40 sps:$4 sm:$0xff]  }
  0xfc   :  { %4231 = vmatpush1.bf16.msra.mxu0 %v6393_v30  ;;  %4150 = vmatprep.subr.bf16.mxu1 %v6398_v31  ;;  %v6471_v30 = vld [vmem:[%s9223_s1 + $0x880] ss:$40 sps:$4 sm:$0xff]   ;;  %v6476_v31 = vld [vmem:[%s9223_s1 + $0x12cc] ss:$40 sps:$4 sm:$0xff]  }
  0xfd   :  { %4232 = vmatprep.subr.bf16.mxu0 %v6401_v32  ;;  %v6479_v32 = vld [vmem:[%s9223_s1 + $0x8d4] ss:$40 sps:$4 sm:$0xff]  }
  0xff   :  { %4151 = vmatpush1.bf16.msra.mxu1 %v6396_v33  ;;  %v6474_v33 = vld [vmem:[%s9223_s1 + $0x12c8] ss:$40 sps:$4 sm:$0xff]  }
 0x100   :  { %4233 = vmatpush1.bf16.msra.mxu0 %v6399_v34  ;;  %4161 = vmatprep.subr.bf16.mxu1 %v6404_v35  ;;  %v6477_v34 = vld [vmem:[%s9223_s1 + $0x8d0] ss:$40 sps:$4 sm:$0xff]   ;;  %v6482_v35 = vld [vmem:[%s9223_s1 + $0x131c] ss:$40 sps:$4 sm:$0xff]  }
 0x101   :  { %4243 = vmatprep.subr.bf16.mxu0 %v6407_v37  ;;  %v6485_v37 = vld [vmem:[%s9223_s1 + $0x924] ss:$40 sps:$4 sm:$0xff]  }
 0x102   :  { %4153 = vmatmul.mubr.bf16.vlgmr.msra.gmra.mrb[4].mxu1 %v7479_v17 }
 0x103   :  { %4235 = vmatmul.mubr.bf16.vlgmr.msra.gmra.mrb[4].mxu0 %v7277_v10  ;;  %4162 = vmatpush1.bf16.msra.mxu1 %v6402_v38  ;;  %v6480_v38 = vld [vmem:[%s9223_s1 + $0x1318] ss:$40 sps:$4 sm:$0xff]  }
 0x104   :  { %4244 = vmatpush1.bf16.msra.mxu0 %v6405_v39  ;;  %4163 = vmatprep.subr.bf16.mxu1 %v6410_v40  ;;  %v6483_v39 = vld [vmem:[%s9223_s1 + $0x920] ss:$40 sps:$4 sm:$0xff]   ;;  %v6488_v40 = vld [vmem:[%s9223_s1 + $0x136c] ss:$40 sps:$4 sm:$0xff]  }
 0x105   :  { %4245 = vmatprep.subr.bf16.mxu0 %v6413_v41  ;;  %4193 = vmatprep.mubr.bf16.mxu1 %v7504_v25  ;;  %v6491_v41 = vld [vmem:[%s9223_s1 + $0x974] ss:$40 sps:$4 sm:$0xff]  }
 0x106   :  { %4275 = vmatprep.mubr.bf16.mxu0 %v7207_v51 }
 0x107   :  { %4164 = vmatpush1.bf16.msra.mxu1 %v6408_v42  ;;  %v6486_v42 = vld [vmem:[%s9223_s1 + $0x1368] ss:$40 sps:$4 sm:$0xff]  }
 0x108   :  { %4246 = vmatpush1.bf16.msra.mxu0 %v6411_v43  ;;  %4165 = vmatprep.subr.bf16.mxu1 %v6416_v44  ;;  %v6489_v43 = vld [vmem:[%s9223_s1 + $0x970] ss:$40 sps:$4 sm:$0xff]   ;;  %v6494_v44 = vld [vmem:[%s9223_s1 + $0x13bc] ss:$40 sps:$4 sm:$0xff]  }
 0x109   :  { %4247 = vmatprep.subr.bf16.mxu0 %v6419_v45  ;;  %v6497_v45 = vld [vmem:[%s9223_s1 + $0x9c4] ss:$40 sps:$4 sm:$0xff]  }
 0x10b   :  { %4166 = vmatpush1.bf16.msra.mxu1 %v6414_v46  ;;  %v6492_v46 = vld [vmem:[%s9223_s1 + $0x13b8] ss:$40 sps:$4 sm:$0xff]  }
 0x10c   :  { %4248 = vmatpush1.bf16.msra.mxu0 %v6417_v48  ;;  %4167 = vmatprep.subr.bf16.mxu1 %v6422_v49  ;;  %v6495_v48 = vld [vmem:[%s9223_s1 + $0x9c0] ss:$40 sps:$4 sm:$0xff]   ;;  %v6500_v49 = vld [vmem:[%s9223_s1 + $0xa14] ss:$40 sps:$4 sm:$0xff]  }
 0x10d   :  { %4249 = vmatprep.subr.bf16.mxu0 %v6425_v50  ;;  %v6503_v50 = vld [vmem:[%s9223_s1 + $0x1c] ss:$40 sps:$4 sm:$0xff]  }
 0x10f   :  { %4168 = vmatpush1.bf16.msra.mxu1 %v6420_v52  ;;  %v6498_v52 = vld [vmem:[%s9223_s1 + $0xa10] ss:$40 sps:$4 sm:$0xff]  }
 0x110   :  { %4250 = vmatpush1.bf16.msra.mxu0 %v6423_v53  ;;  %4169 = vmatprep.subr.bf16.mxu1 %v6428_v54  ;;  %v6501_v53 = vld [vmem:[%s9223_s1 + $0x18] ss:$40 sps:$4 sm:$0xff]   ;;  %v6506_v54 = vld [vmem:[%s9223_s1 + $0xa64] ss:$40 sps:$4 sm:$0xff]  }
 0x111   :  { %4251 = vmatprep.subr.bf16.mxu0 %v6431_v55  ;;  %v6509_v55 = vld [vmem:[%s9223_s1 + $0x6c] ss:$40 sps:$4 sm:$0xff]  }
 0x113   :  { %4170 = vmatpush1.bf16.msra.mxu1 %v6426_v56  ;;  %v6504_v56 = vld [vmem:[%s9223_s1 + $0xa60] ss:$40 sps:$4 sm:$0xff]  }
 0x114   :  { %4252 = vmatpush1.bf16.msra.mxu0 %v6429_v57  ;;  %4171 = vmatprep.subr.bf16.mxu1 %v6434_v58  ;;  %v6507_v57 = vld [vmem:[%s9223_s1 + $0x68] ss:$40 sps:$4 sm:$0xff]   ;;  %v6512_v58 = vld [vmem:[%s9223_s1 + $0xab4] ss:$40 sps:$4 sm:$0xff]  }
 0x115   :  { %4253 = vmatprep.subr.bf16.mxu0 %v6437_v59  ;;  %v7965_v2 = vpop.f32.mrb[0].mxu1  ;;  %v6515_v59 = vld [vmem:[%s9223_s1 + $0xbc] ss:$40 sps:$4 sm:$0xff]  }
 0x116   :  { %v7967_v3 = vpop.f32.mrb[1].mxu1 }
 0x117   :  { %4172 = vmatpush1.bf16.msra.mxu1 %v6432_v60  ;;  %v3912_v4 = vpop.f32.mrb[2].mxu1  ;;  %v6510_v60 = vld [vmem:[%s9223_s1 + $0xab0] ss:$40 sps:$4 sm:$0xff]  }
 0x118   :  { %4254 = vmatpush1.bf16.msra.mxu0 %v6435_v61  ;;  %4173 = vmatprep.subr.bf16.mxu1 %v6440_v62  ;;  %v3913_v7 = vpop.f32.mrb[3].mxu1  ;;  %v6513_v61 = vld [vmem:[%s9223_s1 + $0xb8] ss:$40 sps:$4 sm:$0xff]   ;;  %v6518_v62 = vld [vmem:[%s9223_s1 + $0xb04] ss:$40 sps:$4 sm:$0xff]  }
 0x119   :  { %4255 = vmatprep.subr.bf16.mxu0 %v6443_v63  ;;  %v6521_v63 = vld [vmem:[%s9223_s1 + $0x10c] ss:$40 sps:$4 sm:$0xff]   ;;  %v6525_v7 = vld [vmem:[%s9223_s1 + $0x158] ss:$40 sps:$4 sm:$0xff]  }
 0x11a   :  { %v6524_v4 = vld [vmem:[%s9223_s1 + $0xb54] ss:$40 sps:$4 sm:$0xff]  }
 0x11b   :  { %4174 = vmatpush1.bf16.msra.mxu1 %v6438_v0  ;;  %v6516_v0 = vld [vmem:[%s9223_s1 + $0xb00] ss:$40 sps:$4 sm:$0xff]  }
 0x11c   :  { %4256 = vmatpush1.bf16.msra.mxu0 %v6441_v1  ;;  %4175 = vmatprep.subr.bf16.mxu1 %v6446_v5  ;;  %v6519_v1 = vld [vmem:[%s9223_s1 + $0x108] ss:$40 sps:$4 sm:$0xff]   ;;  %v6527_v5 = vld [vmem:[%s9223_s1 + $0x15c] ss:$40 sps:$4 sm:$0xff]  }
 0x11d   :  { %4257 = vmatprep.subr.bf16.mxu0 %v6449_v6  ;;  %v6522_v6 = vld [vmem:[%s9223_s1 + $0xb50] ss:$40 sps:$4 sm:$0xff]  }
 0x11f   :  { %4176 = vmatpush1.bf16.msra.mxu1 %v6444_v8  ;;  %v6530_v8 = vld [vmem:[%s9223_s1 + $0xba4] ss:$40 sps:$4 sm:$0xff]  }
 0x120   :  { %4258 = vmatpush1.bf16.msra.mxu0 %v6447_v9  ;;  %4177 = vmatprep.subr.bf16.mxu1 %v6452_v12  ;;  %v6533_v9 = vld [vmem:[%s9223_s1 + $0x1ac] ss:$40 sps:$4 sm:$0xff]   ;;  %v6528_v12 = vld [vmem:[%s9223_s1 + $0xba0] ss:$40 sps:$4 sm:$0xff]  }
 0x121   :  { %4259 = vmatprep.subr.bf16.mxu0 %v6455_v13  ;;  %v6531_v13 = vld [vmem:[%s9223_s1 + $0x1a8] ss:$40 sps:$4 sm:$0xff]  }
 0x123   :  { %4178 = vmatpush1.bf16.msra.mxu1 %v6450_v14  ;;  %v6536_v14 = vld [vmem:[%s9223_s1 + $0xbf4] ss:$40 sps:$4 sm:$0xff]  }
 0x124   :  { %4260 = vmatpush1.bf16.msra.mxu0 %v6453_v15  ;;  %4179 = vmatprep.subr.bf16.mxu1 %v6458_v16  ;;  %v6539_v15 = vld [vmem:[%s9223_s1 + $0x1fc] ss:$40 sps:$4 sm:$0xff]   ;;  %v6534_v16 = vld [vmem:[%s9223_s1 + $0xbf0] ss:$40 sps:$4 sm:$0xff]  }
 0x125   :  { %4261 = vmatprep.subr.bf16.mxu0 %v6461_v18  ;;  %v6537_v18 = vld [vmem:[%s9223_s1 + $0x1f8] ss:$40 sps:$4 sm:$0xff]  }
 0x127   :  { %4180 = vmatpush1.bf16.msra.mxu1 %v6456_v19  ;;  %v6542_v19 = vld [vmem:[%s9223_s1 + $0xc44] ss:$40 sps:$4 sm:$0xff]  }
 0x128   :  { %4262 = vmatpush1.bf16.msra.mxu0 %v6459_v20  ;;  %4181 = vmatprep.subr.bf16.mxu1 %v6464_v21  ;;  %v6545_v20 = vld [vmem:[%s9223_s1 + $0x24c] ss:$40 sps:$4 sm:$0xff]   ;;  %v6540_v21 = vld [vmem:[%s9223_s1 + $0xc40] ss:$40 sps:$4 sm:$0xff]  }
 0x129   :  { %4263 = vmatprep.subr.bf16.mxu0 %v6467_v22  ;;  %v6543_v22 = vld [vmem:[%s9223_s1 + $0x248] ss:$40 sps:$4 sm:$0xff]  }
 0x12b   :  { %4182 = vmatpush1.bf16.msra.mxu1 %v6462_v23  ;;  %v6548_v23 = vld [vmem:[%s9223_s1 + $0xc94] ss:$40 sps:$4 sm:$0xff]  }
 0x12c   :  { %4264 = vmatpush1.bf16.msra.mxu0 %v6465_v24  ;;  %4183 = vmatprep.subr.bf16.mxu1 %v6470_v26  ;;  %v6551_v24 = vld [vmem:[%s9223_s1 + $0x29c] ss:$40 sps:$4 sm:$0xff]   ;;  %v6546_v26 = vld [vmem:[%s9223_s1 + $0xc90] ss:$40 sps:$4 sm:$0xff]  }
 0x12d   :  { %4265 = vmatprep.subr.bf16.mxu0 %v6473_v27  ;;  %v6549_v27 = vld [vmem:[%s9223_s1 + $0x298] ss:$40 sps:$4 sm:$0xff]  }
 0x12f   :  { %4184 = vmatpush1.bf16.msra.mxu1 %v6468_v29  ;;  %v6554_v29 = vld [vmem:[%s9223_s1 + $0xce4] ss:$40 sps:$4 sm:$0xff]  }
 0x130   :  { %4266 = vmatpush1.bf16.msra.mxu0 %v6471_v30  ;;  %4185 = vmatprep.subr.bf16.mxu1 %v6476_v31  ;;  %v6557_v30 = vld [vmem:[%s9223_s1 + $0x2ec] ss:$40 sps:$4 sm:$0xff]   ;;  %v6552_v31 = vld [vmem:[%s9223_s1 + $0xce0] ss:$40 sps:$4 sm:$0xff]  }
 0x131   :  { %4267 = vmatprep.subr.bf16.mxu0 %v6479_v32  ;;  %v6555_v32 = vld [vmem:[%s9223_s1 + $0x2e8] ss:$40 sps:$4 sm:$0xff]  }
 0x133   :  { %4186 = vmatpush1.bf16.msra.mxu1 %v6474_v33  ;;  %v6560_v33 = vld [vmem:[%s9223_s1 + $0xd34] ss:$40 sps:$4 sm:$0xff]  }
 0x134   :  { %4268 = vmatpush1.bf16.msra.mxu0 %v6477_v34  ;;  %4187 = vmatprep.subr.bf16.mxu1 %v6482_v35  ;;  %v6563_v34 = vld [vmem:[%s9223_s1 + $0x33c] ss:$40 sps:$4 sm:$0xff]   ;;  %v6558_v35 = vld [vmem:[%s9223_s1 + $0xd30] ss:$40 sps:$4 sm:$0xff]  }
 0x135   :  { %4269 = vmatprep.subr.bf16.mxu0 %v6485_v37  ;;  %v6561_v37 = vld [vmem:[%s9223_s1 + $0x338] ss:$40 sps:$4 sm:$0xff]  }
 0x137   :  { %4188 = vmatpush1.bf16.msra.mxu1 %v6480_v38  ;;  %v6566_v38 = vld [vmem:[%s9223_s1 + $0xd84] ss:$40 sps:$4 sm:$0xff]  }
 0x138   :  { %4270 = vmatpush1.bf16.msra.mxu0 %v6483_v39  ;;  %4189 = vmatprep.subr.bf16.mxu1 %v6488_v40  ;;  %v6569_v39 = vld [vmem:[%s9223_s1 + $0x38c] ss:$40 sps:$4 sm:$0xff]   ;;  %v6564_v40 = vld [vmem:[%s9223_s1 + $0xd80] ss:$40 sps:$4 sm:$0xff]  }
 0x139   :  { %4271 = vmatprep.subr.bf16.mxu0 %v6491_v41  ;;  %v6567_v41 = vld [vmem:[%s9223_s1 + $0x388] ss:$40 sps:$4 sm:$0xff]  }
 0x13b   :  { %4190 = vmatpush1.bf16.msra.mxu1 %v6486_v42  ;;  %v6572_v42 = vld [vmem:[%s9223_s1 + $0xdd4] ss:$40 sps:$4 sm:$0xff]  }
 0x13c   :  { %4272 = vmatpush1.bf16.msra.mxu0 %v6489_v43  ;;  %4191 = vmatprep.subr.bf16.mxu1 %v6494_v44  ;;  %v6575_v43 = vld [vmem:[%s9223_s1 + $0x3dc] ss:$40 sps:$4 sm:$0xff]   ;;  %v6570_v44 = vld [vmem:[%s9223_s1 + $0xdd0] ss:$40 sps:$4 sm:$0xff]  }
 0x13d   :  { %4273 = vmatprep.subr.bf16.mxu0 %v6497_v45  ;;  %v6573_v45 = vld [vmem:[%s9223_s1 + $0x3d8] ss:$40 sps:$4 sm:$0xff]  }
 0x13f   :  { %4192 = vmatpush1.bf16.msra.mxu1 %v6492_v46  ;;  %v6578_v46 = vld [vmem:[%s9223_s1 + $0xe24] ss:$40 sps:$4 sm:$0xff]  }
 0x140   :  { %4274 = vmatpush1.bf16.msra.mxu0 %v6495_v48  ;;  %4366 = vmatprep.subr.bf16.mxu1 %v6503_v50  ;;  %v6581_v48 = vld [vmem:[%s9223_s1 + $0x42c] ss:$40 sps:$4 sm:$0xff]   ;;  %v6579_v50 = vld [vmem:[%s9223_s1 + $0x428] ss:$40 sps:$4 sm:$0xff]  }
 0x141   :  { %4284 = vmatprep.subr.bf16.mxu0 %v6500_v49  ;;  %v6576_v49 = vld [vmem:[%s9223_s1 + $0xe20] ss:$40 sps:$4 sm:$0xff]  }
 0x142   :  { %4194 = vmatmul.mubr.bf16.vlgmr.msra.gmra.mrb[4].mxu1 %v7685_v28 }
 0x143   :  { %4276 = vmatmul.mubr.bf16.vlgmr.msra.gmra.mrb[4].mxu0 %v7279_v11  ;;  %4367 = vmatpush1.bf16.msra.mxu1 %v6501_v53  ;;  %v6587_v53 = vld [vmem:[%s9223_s1 + $0x47c] ss:$40 sps:$4 sm:$0xff]  }
 0x144   :  { %4285 = vmatpush1.bf16.msra.mxu0 %v6498_v52  ;;  %4368 = vmatprep.subr.bf16.mxu1 %v6509_v55  ;;  %v6584_v52 = vld [vmem:[%s9223_s1 + $0xe74] ss:$40 sps:$4 sm:$0xff]   ;;  %v6585_v55 = vld [vmem:[%s9223_s1 + $0x478] ss:$40 sps:$4 sm:$0xff]  }
 0x145   :  { %4286 = vmatprep.subr.bf16.mxu0 %v6506_v54  ;;  %4316 = vmatprep.mubr.bf16.mxu0 %v7356_v36  ;;  %v6582_v54 = vld [vmem:[%s9223_s1 + $0xe70] ss:$40 sps:$4 sm:$0xff]  }
 0x146   :  { %4398 = vmatprep.mubr.bf16.mxu1 %v7196_v47 }
 0x147   :  { %4369 = vmatpush1.bf16.msra.mxu1 %v6507_v57  ;;  %v6593_v57 = vld [vmem:[%s9223_s1 + $0x4cc] ss:$40 sps:$4 sm:$0xff]  }
 0x148   :  { %4287 = vmatpush1.bf16.msra.mxu0 %v6504_v56  ;;  %4370 = vmatprep.subr.bf16.mxu1 %v6515_v59  ;;  %v6590_v56 = vld [vmem:[%s9223_s1 + $0xec4] ss:$40 sps:$4 sm:$0xff]   ;;  %v6591_v59 = vld [vmem:[%s9223_s1 + $0x4c8] ss:$40 sps:$4 sm:$0xff]  }
 0x149   :  { %4288 = vmatprep.subr.bf16.mxu0 %v6512_v58  ;;  %v6588_v58 = vld [vmem:[%s9223_s1 + $0xec0] ss:$40 sps:$4 sm:$0xff]  }
 0x14b   :  { %4371 = vmatpush1.bf16.msra.mxu1 %v6513_v61  ;;  %v6599_v61 = vld [vmem:[%s9223_s1 + $0x51c] ss:$40 sps:$4 sm:$0xff]  }
 0x14c   :  { %4289 = vmatpush1.bf16.msra.mxu0 %v6510_v60  ;;  %4372 = vmatprep.subr.bf16.mxu1 %v6521_v63  ;;  %v6596_v60 = vld [vmem:[%s9223_s1 + $0xf14] ss:$40 sps:$4 sm:$0xff]   ;;  %v6597_v63 = vld [vmem:[%s9223_s1 + $0x518] ss:$40 sps:$4 sm:$0xff]  }
 0x14d   :  { %4290 = vmatprep.subr.bf16.mxu0 %v6518_v62  ;;  %v6594_v62 = vld [vmem:[%s9223_s1 + $0xf10] ss:$40 sps:$4 sm:$0xff]  }
 0x14f   :  { %4373 = vmatpush1.bf16.msra.mxu1 %v6519_v1  ;;  %v6605_v1 = vld [vmem:[%s9223_s1 + $0x56c] ss:$40 sps:$4 sm:$0xff]  }
 0x150   :  { %4291 = vmatpush1.bf16.msra.mxu0 %v6516_v0  ;;  %4374 = vmatprep.subr.bf16.mxu1 %v6527_v5  ;;  %v6602_v0 = vld [vmem:[%s9223_s1 + $0xf64] ss:$40 sps:$4 sm:$0xff]   ;;  %v6603_v5 = vld [vmem:[%s9223_s1 + $0x568] ss:$40 sps:$4 sm:$0xff]  }
 0x151   :  { %4292 = vmatprep.subr.bf16.mxu0 %v6524_v4  ;;  %v6600_v4 = vld [vmem:[%s9223_s1 + $0xf60] ss:$40 sps:$4 sm:$0xff]  }
 0x153   :  { %4375 = vmatpush1.bf16.msra.mxu1 %v6525_v7  ;;  %v6611_v7 = vld [vmem:[%s9223_s1 + $0x5bc] ss:$40 sps:$4 sm:$0xff]  }
 0x154   :  { %4293 = vmatpush1.bf16.msra.mxu0 %v6522_v6  ;;  %4376 = vmatprep.subr.bf16.mxu1 %v6533_v9  ;;  %v6608_v6 = vld [vmem:[%s9223_s1 + $0xfb4] ss:$40 sps:$4 sm:$0xff]   ;;  %v6609_v9 = vld [vmem:[%s9223_s1 + $0x5b8] ss:$40 sps:$4 sm:$0xff]  }
 0x155   :  { %4294 = vmatprep.subr.bf16.mxu0 %v6530_v8  ;;  %v6606_v8 = vld [vmem:[%s9223_s1 + $0xfb0] ss:$40 sps:$4 sm:$0xff]  }
 0x157   :  { %4377 = vmatpush1.bf16.msra.mxu1 %v6531_v13  ;;  %v6617_v13 = vld [vmem:[%s9223_s1 + $0x60c] ss:$40 sps:$4 sm:$0xff]  }
 0x158   :  { %4295 = vmatpush1.bf16.msra.mxu0 %v6528_v12  ;;  %4378 = vmatprep.subr.bf16.mxu1 %v6539_v15  ;;  %v6614_v12 = vld [vmem:[%s9223_s1 + $0x1004] ss:$40 sps:$4 sm:$0xff]   ;;  %v6615_v15 = vld [vmem:[%s9223_s1 + $0x608] ss:$40 sps:$4 sm:$0xff]  }
 0x159   :  { %4296 = vmatprep.subr.bf16.mxu0 %v6536_v14  ;;  %v6612_v14 = vld [vmem:[%s9223_s1 + $0x1000] ss:$40 sps:$4 sm:$0xff]  }
 0x15b   :  { %4379 = vmatpush1.bf16.msra.mxu1 %v6537_v18  ;;  %v6623_v18 = vld [vmem:[%s9223_s1 + $0x65c] ss:$40 sps:$4 sm:$0xff]  }
 0x15c   :  { %4297 = vmatpush1.bf16.msra.mxu0 %v6534_v16  ;;  %4380 = vmatprep.subr.bf16.mxu1 %v6545_v20  ;;  %v6620_v16 = vld [vmem:[%s9223_s1 + $0x1054] ss:$40 sps:$4 sm:$0xff]   ;;  %v6621_v20 = vld [vmem:[%s9223_s1 + $0x658] ss:$40 sps:$4 sm:$0xff]  }
 0x15d   :  { %4298 = vmatprep.subr.bf16.mxu0 %v6542_v19  ;;  %v6618_v19 = vld [vmem:[%s9223_s1 + $0x1050] ss:$40 sps:$4 sm:$0xff]  }
 0x15f   :  { %4381 = vmatpush1.bf16.msra.mxu1 %v6543_v22  ;;  %v6629_v22 = vld [vmem:[%s9223_s1 + $0x6ac] ss:$40 sps:$4 sm:$0xff]  }
 0x160   :  { %4299 = vmatpush1.bf16.msra.mxu0 %v6540_v21  ;;  %4382 = vmatprep.subr.bf16.mxu1 %v6551_v24  ;;  %v6626_v21 = vld [vmem:[%s9223_s1 + $0x10a4] ss:$40 sps:$4 sm:$0xff]   ;;  %v6627_v24 = vld [vmem:[%s9223_s1 + $0x6a8] ss:$40 sps:$4 sm:$0xff]  }
 0x161   :  { %4300 = vmatprep.subr.bf16.mxu0 %v6548_v23  ;;  %v6624_v23 = vld [vmem:[%s9223_s1 + $0x10a0] ss:$40 sps:$4 sm:$0xff]  }
 0x163   :  { %4383 = vmatpush1.bf16.msra.mxu1 %v6549_v27  ;;  %v6635_v27 = vld [vmem:[%s9223_s1 + $0x6fc] ss:$40 sps:$4 sm:$0xff]  }
 0x164   :  { %4301 = vmatpush1.bf16.msra.mxu0 %v6546_v26  ;;  %4384 = vmatprep.subr.bf16.mxu1 %v6557_v30  ;;  %v6632_v26 = vld [vmem:[%s9223_s1 + $0x10f4] ss:$40 sps:$4 sm:$0xff]  }
 0x165   :  { %4302 = vmatprep.subr.bf16.mxu0 %v6554_v29 }
 0x167   :  { %4385 = vmatpush1.bf16.msra.mxu1 %v6555_v32 }
 0x168   :  { %4303 = vmatpush1.bf16.msra.mxu0 %v6552_v31  ;;  %4386 = vmatprep.subr.bf16.mxu1 %v6563_v34  ;;  %v6630_v34 = vld [vmem:[%s9223_s1 + $0x10f0] ss:$40 sps:$4 sm:$0xff]  }
 0x169   :  { %4304 = vmatprep.subr.bf16.mxu0 %v6560_v33 }
 0x16b   :  { %4387 = vmatpush1.bf16.msra.mxu1 %v6561_v37 }
 0x16c   :  { %4305 = vmatpush1.bf16.msra.mxu0 %v6558_v35  ;;  %4388 = vmatprep.subr.bf16.mxu1 %v6569_v39  ;;  %v6633_v35 = vld [vmem:[%s9223_s1 + $0x6f8] ss:$40 sps:$4 sm:$0xff]   ;;  %v6639_v39 = vld [vmem:[%s9223_s1 + $0x748] ss:$40 sps:$4 sm:$0xff]  }
 0x16d   :  { %4306 = vmatprep.subr.bf16.mxu0 %v6566_v38  ;;  %v6636_v38 = vld [vmem:[%s9223_s1 + $0x1140] ss:$40 sps:$4 sm:$0xff]  }
 0x16f   :  { %4389 = vmatpush1.bf16.msra.mxu1 %v6567_v41  ;;  %v6647_v41 = vld [vmem:[%s9223_s1 + $0x79c] ss:$40 sps:$4 sm:$0xff]  }
 0x170   :  { %4307 = vmatpush1.bf16.msra.mxu0 %v6564_v40  ;;  %4390 = vmatprep.subr.bf16.mxu1 %v6575_v43  ;;  %v6644_v40 = vld [vmem:[%s9223_s1 + $0x1194] ss:$40 sps:$4 sm:$0xff]   ;;  %v6645_v43 = vld [vmem:[%s9223_s1 + $0x798] ss:$40 sps:$4 sm:$0xff]  }
 0x171   :  { %4308 = vmatprep.subr.bf16.mxu0 %v6572_v42  ;;  %v6642_v42 = vld [vmem:[%s9223_s1 + $0x1190] ss:$40 sps:$4 sm:$0xff]  }
 0x173   :  { %4391 = vmatpush1.bf16.msra.mxu1 %v6573_v45  ;;  %v6653_v45 = vld [vmem:[%s9223_s1 + $0x7ec] ss:$40 sps:$4 sm:$0xff]  }
 0x174   :  { %4309 = vmatpush1.bf16.msra.mxu0 %v6570_v44  ;;  %4392 = vmatprep.subr.bf16.mxu1 %v6581_v48  ;;  %v6650_v44 = vld [vmem:[%s9223_s1 + $0x11e4] ss:$40 sps:$4 sm:$0xff]   ;;  %v6651_v48 = vld [vmem:[%s9223_s1 + $0x7e8] ss:$40 sps:$4 sm:$0xff]  }
 0x175   :  { %4310 = vmatprep.subr.bf16.mxu0 %v6578_v46  ;;  %v6648_v46 = vld [vmem:[%s9223_s1 + $0x11e0] ss:$40 sps:$4 sm:$0xff]  }
 0x177   :  { %4393 = vmatpush1.bf16.msra.mxu1 %v6579_v50  ;;  %v6659_v50 = vld [vmem:[%s9223_s1 + $0x83c] ss:$40 sps:$4 sm:$0xff]  }
 0x178   :  { %4311 = vmatpush1.bf16.msra.mxu0 %v6576_v49  ;;  %4394 = vmatprep.subr.bf16.mxu1 %v6587_v53  ;;  %v6656_v49 = vld [vmem:[%s9223_s1 + $0x1234] ss:$40 sps:$4 sm:$0xff]   ;;  %v6657_v53 = vld [vmem:[%s9223_s1 + $0x838] ss:$40 sps:$4 sm:$0xff]  }
 0x179   :  { %4312 = vmatprep.subr.bf16.mxu0 %v6584_v52  ;;  %v6654_v52 = vld [vmem:[%s9223_s1 + $0x1230] ss:$40 sps:$4 sm:$0xff]  }
 0x17b   :  { %4395 = vmatpush1.bf16.msra.mxu1 %v6585_v55  ;;  %v6665_v55 = vld [vmem:[%s9223_s1 + $0x88c] ss:$40 sps:$4 sm:$0xff]  }
 0x17c   :  { %4313 = vmatpush1.bf16.msra.mxu0 %v6582_v54  ;;  %4396 = vmatprep.subr.bf16.mxu1 %v6593_v57  ;;  %v6662_v54 = vld [vmem:[%s9223_s1 + $0x1284] ss:$40 sps:$4 sm:$0xff]   ;;  %v6663_v57 = vld [vmem:[%s9223_s1 + $0x888] ss:$40 sps:$4 sm:$0xff]  }
 0x17d   :  { %4314 = vmatprep.subr.bf16.mxu0 %v6590_v56  ;;  %v6660_v56 = vld [vmem:[%s9223_s1 + $0x1280] ss:$40 sps:$4 sm:$0xff]  }
 0x17f   :  { %4397 = vmatpush1.bf16.msra.mxu1 %v6591_v59  ;;  %v6671_v59 = vld [vmem:[%s9223_s1 + $0x8dc] ss:$40 sps:$4 sm:$0xff]  }
 0x180   :  { %4315 = vmatpush1.bf16.msra.mxu0 %v6588_v58  ;;  %4407 = vmatprep.subr.bf16.mxu1 %v6599_v61  ;;  %v6668_v58 = vld [vmem:[%s9223_s1 + $0x12d4] ss:$40 sps:$4 sm:$0xff]   ;;  %v6669_v61 = vld [vmem:[%s9223_s1 + $0x8d8] ss:$40 sps:$4 sm:$0xff]  }
 0x181   :  { %4325 = vmatprep.subr.bf16.mxu0 %v6596_v60  ;;  %v6666_v60 = vld [vmem:[%s9223_s1 + $0x12d0] ss:$40 sps:$4 sm:$0xff]  }
 0x182   :  { %4399 = vmatmul.mubr.bf16.vlgmr.msra.gmra.mrb[8].mxu1 %v7277_v10 }
 0x183   :  { %4317 = vmatmul.mubr.bf16.vlgmr.msra.gmra.mrb[4].mxu0 %v7479_v17  ;;  %4408 = vmatpush1.bf16.msra.mxu1 %v6597_v63  ;;  %v6677_v63 = vld [vmem:[%s9223_s1 + $0x92c] ss:$40 sps:$4 sm:$0xff]  }
 0x184   :  { %4326 = vmatpush1.bf16.msra.mxu0 %v6594_v62  ;;  %4409 = vmatprep.subr.bf16.mxu1 %v6605_v1  ;;  %v6674_v62 = vld [vmem:[%s9223_s1 + $0x1324] ss:$40 sps:$4 sm:$0xff]   ;;  %v6675_v1 = vld [vmem:[%s9223_s1 + $0x928] ss:$40 sps:$4 sm:$0xff]  }
 0x185   :  { %4327 = vmatprep.subr.bf16.mxu0 %v6602_v0  ;;  %4357 = vmatprep.mubr.bf16.mxu0 %v7504_v25  ;;  %v6672_v0 = vld [vmem:[%s9223_s1 + $0x1320] ss:$40 sps:$4 sm:$0xff]  }
 0x186   :  { %4439 = vmatprep.mubr.bf16.mxu1 %v7207_v51 }
 0x187   :  { %4410 = vmatpush1.bf16.msra.mxu1 %v6603_v5  ;;  %v6683_v5 = vld [vmem:[%s9223_s1 + $0x97c] ss:$40 sps:$4 sm:$0xff]  }
 0x188   :  { %4328 = vmatpush1.bf16.msra.mxu0 %v6600_v4  ;;  %4411 = vmatprep.subr.bf16.mxu1 %v6611_v7  ;;  %v6680_v4 = vld [vmem:[%s9223_s1 + $0x1374] ss:$40 sps:$4 sm:$0xff]   ;;  %v6681_v7 = vld [vmem:[%s9223_s1 + $0x978] ss:$40 sps:$4 sm:$0xff]  }
 0x189   :  { %4329 = vmatprep.subr.bf16.mxu0 %v6608_v6  ;;  %v6678_v6 = vld [vmem:[%s9223_s1 + $0x1370] ss:$40 sps:$4 sm:$0xff]  }
 0x18b   :  { %4412 = vmatpush1.bf16.msra.mxu1 %v6609_v9  ;;  %v6689_v9 = vld [vmem:[%s9223_s1 + $0x9cc] ss:$40 sps:$4 sm:$0xff]  }
 0x18c   :  { %4330 = vmatpush1.bf16.msra.mxu0 %v6606_v8  ;;  %4413 = vmatprep.subr.bf16.mxu1 %v6617_v13  ;;  %v6686_v8 = vld [vmem:[%s9223_s1 + $0x13c4] ss:$40 sps:$4 sm:$0xff]   ;;  %v6687_v13 = vld [vmem:[%s9223_s1 + $0x9c8] ss:$40 sps:$4 sm:$0xff]  }
 0x18d   :  { %4331 = vmatprep.subr.bf16.mxu0 %v6614_v12  ;;  %v6684_v12 = vld [vmem:[%s9223_s1 + $0x13c0] ss:$40 sps:$4 sm:$0xff]  }
 0x18f   :  { %4414 = vmatpush1.bf16.msra.mxu1 %v6615_v15  ;;  %v6695_v15 = vld [vmem:[%s9223_s1 + $0x24] ss:$40 sps:$4 sm:$0xff]  }
 0x190   :  { %4332 = vmatpush1.bf16.msra.mxu0 %v6612_v14  ;;  %4415 = vmatprep.subr.bf16.mxu1 %v6623_v18  ;;  %v6692_v14 = vld [vmem:[%s9223_s1 + $0xa1c] ss:$40 sps:$4 sm:$0xff]   ;;  %v6693_v18 = vld [vmem:[%s9223_s1 + $0x20] ss:$40 sps:$4 sm:$0xff]  }
 0x191   :  { %4333 = vmatprep.subr.bf16.mxu0 %v6620_v16  ;;  %v6690_v16 = vld [vmem:[%s9223_s1 + $0xa18] ss:$40 sps:$4 sm:$0xff]  }
 0x193   :  { %4416 = vmatpush1.bf16.msra.mxu1 %v6621_v20  ;;  %v6701_v20 = vld [vmem:[%s9223_s1 + $0x74] ss:$40 sps:$4 sm:$0xff]  }
 0x194   :  { %4334 = vmatpush1.bf16.msra.mxu0 %v6618_v19  ;;  %4417 = vmatprep.subr.bf16.mxu1 %v6629_v22  ;;  %v6698_v19 = vld [vmem:[%s9223_s1 + $0xa6c] ss:$40 sps:$4 sm:$0xff]   ;;  %v6699_v22 = vld [vmem:[%s9223_s1 + $0x70] ss:$40 sps:$4 sm:$0xff]  }
 0x195   :  { %4335 = vmatprep.subr.bf16.mxu0 %v6626_v21  ;;  %v6696_v21 = vld [vmem:[%s9223_s1 + $0xa68] ss:$40 sps:$4 sm:$0xff]  }
 0x196   :  { %v4031_v29 = vpop.f32.mrb[0].mxu0 }
 0x197   :  { %v8356_v30 = vadd.f32 %v4031_v29, %v7965_v2  ;;  %v4033_v31 = vpop.f32.mrb[1].mxu0  ;;  %4418 = vmatpush1.bf16.msra.mxu1 %v6627_v24  ;;  %v6638_v2 = vld [vmem:[%s9223_s1 + $0x1144] ss:$40 sps:$4 sm:$0xff]  }
 0x198   :  { %v8359_v32 = vadd.f32 %v4033_v31, %v7967_v3  ;;  %v4035_v33 = vpop.f32.mrb[2].mxu0  ;;  %4336 = vmatpush1.bf16.msra.mxu0 %v6624_v23  ;;  %4419 = vmatprep.subr.bf16.mxu1 %v6635_v27  ;;  %v6641_v3 = vld [vmem:[%s9223_s1 + $0x74c] ss:$40 sps:$4 sm:$0xff]   ;;  %v6704_v23 = vld [vmem:[%s9223_s1 + $0xabc] ss:$40 sps:$4 sm:$0xff]  }
 0x199   :  { %v4036_v37 = vpop.f32.mrb[3].mxu0  ;;  %4337 = vmatprep.subr.bf16.mxu0 %v6632_v26  ;;  %v6707_v24 = vld [vmem:[%s9223_s1 + $0xc4] ss:$40 sps:$4 sm:$0xff]   ;;  %v6702_v26 = vld [vmem:[%s9223_s1 + $0xab8] ss:$40 sps:$4 sm:$0xff]  }
 0x19a   :  { %v6705_v27 = vld [vmem:[%s9223_s1 + $0xc0] ss:$40 sps:$4 sm:$0xff]   ;;  %v6710_v29 = vld [vmem:[%s9223_s1 + $0xb0c] ss:$40 sps:$4 sm:$0xff]   ;;  %v6711_v33 = vld [vmem:[%s9223_s1 + $0x110] ss:$40 sps:$4 sm:$0xff]  }
 0x19b   :  { %4420 = vmatpush1.bf16.msra.mxu1 %v6633_v35  ;;  %v6708_v31 = vld [vmem:[%s9223_s1 + $0xb08] ss:$40 sps:$4 sm:$0xff]   ;;  %v6719_v35 = vld [vmem:[%s9223_s1 + $0x164] ss:$40 sps:$4 sm:$0xff]   ;;  %v6714_v37 = vld [vmem:[%s9223_s1 + $0xb58] ss:$40 sps:$4 sm:$0xff]  }
 0x19c   :  { %4338 = vmatpush1.bf16.msra.mxu0 %v6630_v34  ;;  %4421 = vmatprep.subr.bf16.mxu1 %v6641_v3  ;;  %v6716_v34 = vld [vmem:[%s9223_s1 + $0xb5c] ss:$40 sps:$4 sm:$0xff]   ;;  %v6722_v3 = vld [vmem:[%s9223_s1 + $0xbac] ss:$40 sps:$4 sm:$0xff]  }
 0x19d   :  { %4339 = vmatprep.subr.bf16.mxu0 %v6638_v2  ;;  %v6717_v2 = vld [vmem:[%s9223_s1 + $0x160] ss:$40 sps:$4 sm:$0xff]  }
 0x19f   :  { %4422 = vmatpush1.bf16.msra.mxu1 %v6639_v39  ;;  %v6720_v39 = vld [vmem:[%s9223_s1 + $0xba8] ss:$40 sps:$4 sm:$0xff]  }
 0x1a0   :  { %4340 = vmatpush1.bf16.msra.mxu0 %v6636_v38  ;;  %4423 = vmatprep.subr.bf16.mxu1 %v6647_v41  ;;  %v6725_v38 = vld [vmem:[%s9223_s1 + $0x1b4] ss:$40 sps:$4 sm:$0xff]  }
 0x1a1   :  { %4341 = vmatprep.subr.bf16.mxu0 %v6644_v40  ;;  %v6723_v40 = vld [vmem:[%s9223_s1 + $0x1b0] ss:$40 sps:$4 sm:$0xff]   ;;  %v6728_v41 = vld [vmem:[%s9223_s1 + $0xbfc] ss:$40 sps:$4 sm:$0xff]  }
 0x1a3   :  { %4424 = vmatpush1.bf16.msra.mxu1 %v6645_v43  ;;  %v6726_v43 = vld [vmem:[%s9223_s1 + $0xbf8] ss:$40 sps:$4 sm:$0xff]  }
 0x1a4   :  { %4342 = vmatpush1.bf16.msra.mxu0 %v6642_v42  ;;  %4425 = vmatprep.subr.bf16.mxu1 %v6653_v45  ;;  %v6731_v42 = vld [vmem:[%s9223_s1 + $0x204] ss:$40 sps:$4 sm:$0xff]  }
 0x1a5   :  { %4343 = vmatprep.subr.bf16.mxu0 %v6650_v44  ;;  %v6729_v44 = vld [vmem:[%s9223_s1 + $0x200] ss:$40 sps:$4 sm:$0xff]   ;;  %v6734_v45 = vld [vmem:[%s9223_s1 + $0xc4c] ss:$40 sps:$4 sm:$0xff]  }
 0x1a7   :  { %4426 = vmatpush1.bf16.msra.mxu1 %v6651_v48  ;;  %v6732_v48 = vld [vmem:[%s9223_s1 + $0xc48] ss:$40 sps:$4 sm:$0xff]  }
 0x1a8   :  { %4344 = vmatpush1.bf16.msra.mxu0 %v6648_v46  ;;  %4427 = vmatprep.subr.bf16.mxu1 %v6659_v50  ;;  %v6737_v46 = vld [vmem:[%s9223_s1 + $0x254] ss:$40 sps:$4 sm:$0xff]  }
 0x1a9   :  { %4345 = vmatprep.subr.bf16.mxu0 %v6656_v49  ;;  %v6735_v49 = vld [vmem:[%s9223_s1 + $0x250] ss:$40 sps:$4 sm:$0xff]   ;;  %v6740_v50 = vld [vmem:[%s9223_s1 + $0xc9c] ss:$40 sps:$4 sm:$0xff]  }
 0x1ab   :  { %4428 = vmatpush1.bf16.msra.mxu1 %v6657_v53  ;;  %v6738_v53 = vld [vmem:[%s9223_s1 + $0xc98] ss:$40 sps:$4 sm:$0xff]  }
 0x1ac   :  { %4346 = vmatpush1.bf16.msra.mxu0 %v6654_v52  ;;  %4429 = vmatprep.subr.bf16.mxu1 %v6665_v55  ;;  %v6743_v52 = vld [vmem:[%s9223_s1 + $0x2a4] ss:$40 sps:$4 sm:$0xff]  }
 0x1ad   :  { %4347 = vmatprep.subr.bf16.mxu0 %v6662_v54  ;;  %v6741_v54 = vld [vmem:[%s9223_s1 + $0x2a0] ss:$40 sps:$4 sm:$0xff]   ;;  %v6746_v55 = vld [vmem:[%s9223_s1 + $0xcec] ss:$40 sps:$4 sm:$0xff]  }
 0x1af   :  { %4430 = vmatpush1.bf16.msra.mxu1 %v6663_v57  ;;  %v6744_v57 = vld [vmem:[%s9223_s1 + $0xce8] ss:$40 sps:$4 sm:$0xff]  }
 0x1b0   :  { %4348 = vmatpush1.bf16.msra.mxu0 %v6660_v56  ;;  %4431 = vmatprep.subr.bf16.mxu1 %v6671_v59  ;;  %v6749_v56 = vld [vmem:[%s9223_s1 + $0x2f4] ss:$40 sps:$4 sm:$0xff]  }
 0x1b1   :  { %4349 = vmatprep.subr.bf16.mxu0 %v6668_v58  ;;  %v6747_v58 = vld [vmem:[%s9223_s1 + $0x2f0] ss:$40 sps:$4 sm:$0xff]   ;;  %v6752_v59 = vld [vmem:[%s9223_s1 + $0xd3c] ss:$40 sps:$4 sm:$0xff]  }
 0x1b3   :  { %4432 = vmatpush1.bf16.msra.mxu1 %v6669_v61  ;;  %v6750_v61 = vld [vmem:[%s9223_s1 + $0xd38] ss:$40 sps:$4 sm:$0xff]  }
 0x1b4   :  { %4350 = vmatpush1.bf16.msra.mxu0 %v6666_v60  ;;  %4433 = vmatprep.subr.bf16.mxu1 %v6677_v63  ;;  %v6755_v60 = vld [vmem:[%s9223_s1 + $0x344] ss:$40 sps:$4 sm:$0xff]  }
 0x1b5   :  { %4351 = vmatprep.subr.bf16.mxu0 %v6674_v62  ;;  %v6753_v62 = vld [vmem:[%s9223_s1 + $0x340] ss:$40 sps:$4 sm:$0xff]   ;;  %v6758_v63 = vld [vmem:[%s9223_s1 + $0xd8c] ss:$40 sps:$4 sm:$0xff]  }
 0x1b7   :  { %4434 = vmatpush1.bf16.msra.mxu1 %v6675_v1  ;;  %v6756_v1 = vld [vmem:[%s9223_s1 + $0xd88] ss:$40 sps:$4 sm:$0xff]  }
 0x1b8   :  { %4352 = vmatpush1.bf16.msra.mxu0 %v6672_v0  ;;  %4435 = vmatprep.subr.bf16.mxu1 %v6683_v5  ;;  %v6761_v0 = vld [vmem:[%s9223_s1 + $0x394] ss:$40 sps:$4 sm:$0xff]  }
 0x1b9   :  { %4353 = vmatprep.subr.bf16.mxu0 %v6680_v4  ;;  %v6759_v4 = vld [vmem:[%s9223_s1 + $0x390] ss:$40 sps:$4 sm:$0xff]   ;;  %v6764_v5 = vld [vmem:[%s9223_s1 + $0xddc] ss:$40 sps:$4 sm:$0xff]  }
 0x1bb   :  { %4436 = vmatpush1.bf16.msra.mxu1 %v6681_v7  ;;  %v6762_v7 = vld [vmem:[%s9223_s1 + $0xdd8] ss:$40 sps:$4 sm:$0xff]  }
 0x1bc   :  { %4354 = vmatpush1.bf16.msra.mxu0 %v6678_v6  ;;  %4437 = vmatprep.subr.bf16.mxu1 %v6689_v9  ;;  %v6767_v6 = vld [vmem:[%s9223_s1 + $0x3e4] ss:$40 sps:$4 sm:$0xff]  }
 0x1bd   :  { %4355 = vmatprep.subr.bf16.mxu0 %v6686_v8  ;;  %v6765_v8 = vld [vmem:[%s9223_s1 + $0x3e0] ss:$40 sps:$4 sm:$0xff]   ;;  %v6770_v9 = vld [vmem:[%s9223_s1 + $0xe2c] ss:$40 sps:$4 sm:$0xff]  }
 0x1bf   :  { %4438 = vmatpush1.bf16.msra.mxu1 %v6687_v13  ;;  %v6768_v13 = vld [vmem:[%s9223_s1 + $0xe28] ss:$40 sps:$4 sm:$0xff]  }
 0x1c0   :  { %4356 = vmatpush1.bf16.msra.mxu0 %v6684_v12  ;;  %4448 = vmatprep.subr.bf16.mxu1 %v6692_v14  ;;  %v6773_v12 = vld [vmem:[%s9223_s1 + $0x434] ss:$40 sps:$4 sm:$0xff]   ;;  %v6771_v14 = vld [vmem:[%s9223_s1 + $0x430] ss:$40 sps:$4 sm:$0xff]  }
 0x1c1   :  { %4530 = vmatprep.subr.bf16.mxu0 %v6695_v15  ;;  %v6776_v15 = vld [vmem:[%s9223_s1 + $0xe7c] ss:$40 sps:$4 sm:$0xff]  }
 0x1c2   :  { %4440 = vmatmul.mubr.bf16.vlgmr.msra.gmra.mrb[8].mxu1 %v7279_v11 }
 0x1c3   :  { %4358 = vmatmul.mubr.bf16.vlgmr.msra.gmra.mrb[4].mxu0 %v7685_v28  ;;  %4449 = vmatpush1.bf16.msra.mxu1 %v6690_v16  ;;  %v6779_v16 = vld [vmem:[%s9223_s1 + $0x484] ss:$40 sps:$4 sm:$0xff]  }
 0x1c4   :  { %4531 = vmatpush1.bf16.msra.mxu0 %v6693_v18  ;;  %4450 = vmatprep.subr.bf16.mxu1 %v6698_v19  ;;  %v6774_v18 = vld [vmem:[%s9223_s1 + $0xe78] ss:$40 sps:$4 sm:$0xff]  }
 0x1c5   :  { %4532 = vmatprep.subr.bf16.mxu0 %v6701_v20  ;;  %4480 = vmatprep.mubr.bf16.mxu1 %v7356_v36  ;;  %v6777_v19 = vld [vmem:[%s9223_s1 + $0x480] ss:$40 sps:$4 sm:$0xff]   ;;  %v6782_v20 = vld [vmem:[%s9223_s1 + $0xecc] ss:$40 sps:$4 sm:$0xff]  }
 0x1c6   :  { %4562 = vmatprep.mubr.bf16.mxu0 %v7196_v47  ;;  %v6713_v47 = vld [vmem:[%s9223_s1 + $0x114] ss:$40 sps:$4 sm:$0xff]  }
 0x1c7   :  { %4451 = vmatpush1.bf16.msra.mxu1 %v6696_v21  ;;  %v6785_v21 = vld [vmem:[%s9223_s1 + $0x4d4] ss:$40 sps:$4 sm:$0xff]  }
 0x1c8   :  { %4533 = vmatpush1.bf16.msra.mxu0 %v6699_v22  ;;  %4452 = vmatprep.subr.bf16.mxu1 %v6704_v23  ;;  %v6780_v22 = vld [vmem:[%s9223_s1 + $0xec8] ss:$40 sps:$4 sm:$0xff]  }
 0x1c9   :  { %4534 = vmatprep.subr.bf16.mxu0 %v6707_v24  ;;  %v6783_v23 = vld [vmem:[%s9223_s1 + $0x4d0] ss:$40 sps:$4 sm:$0xff]   ;;  %v6788_v24 = vld [vmem:[%s9223_s1 + $0xf1c] ss:$40 sps:$4 sm:$0xff]  }
 0x1cb   :  { %4453 = vmatpush1.bf16.msra.mxu1 %v6702_v26  ;;  %v6791_v26 = vld [vmem:[%s9223_s1 + $0x524] ss:$40 sps:$4 sm:$0xff]  }
 0x1cc   :  { %4535 = vmatpush1.bf16.msra.mxu0 %v6705_v27  ;;  %4454 = vmatprep.subr.bf16.mxu1 %v6710_v29  ;;  %v6786_v27 = vld [vmem:[%s9223_s1 + $0xf18] ss:$40 sps:$4 sm:$0xff]  }
 0x1cd   :  { %4536 = vmatprep.subr.bf16.mxu0 %v6713_v47  ;;  %v6789_v29 = vld [vmem:[%s9223_s1 + $0x520] ss:$40 sps:$4 sm:$0xff]   ;;  %v6794_v47 = vld [vmem:[%s9223_s1 + $0xf6c] ss:$40 sps:$4 sm:$0xff]  }
 0x1cf   :  { %4455 = vmatpush1.bf16.msra.mxu1 %v6708_v31  ;;  %v6797_v31 = vld [vmem:[%s9223_s1 + $0x574] ss:$40 sps:$4 sm:$0xff]  }
 0x1d0   :  { %4537 = vmatpush1.bf16.msra.mxu0 %v6711_v33  ;;  %4456 = vmatprep.subr.bf16.mxu1 %v6716_v34  ;;  %v6792_v33 = vld [vmem:[%s9223_s1 + $0xf68] ss:$40 sps:$4 sm:$0xff]  }
 0x1d1   :  { %4538 = vmatprep.subr.bf16.mxu0 %v6719_v35  ;;  %v6795_v34 = vld [vmem:[%s9223_s1 + $0x570] ss:$40 sps:$4 sm:$0xff]   ;;  %v6800_v35 = vld [vmem:[%s9223_s1 + $0xfbc] ss:$40 sps:$4 sm:$0xff]  }
 0x1d3   :  { %4457 = vmatpush1.bf16.msra.mxu1 %v6714_v37  ;;  %v6798_v37 = vld [vmem:[%s9223_s1 + $0xfb8] ss:$40 sps:$4 sm:$0xff]  }
 0x1d4   :  { %4539 = vmatpush1.bf16.msra.mxu0 %v6717_v2  ;;  %4458 = vmatprep.subr.bf16.mxu1 %v6722_v3  ;;  %v6801_v2 = vld [vmem:[%s9223_s1 + $0x5c0] ss:$40 sps:$4 sm:$0xff]   ;;  %v6806_v3 = vld [vmem:[%s9223_s1 + $0x100c] ss:$40 sps:$4 sm:$0xff]  }
 0x1d5   :  { %4540 = vmatprep.subr.bf16.mxu0 %v6725_v38  ;;  %v6804_v38 = vld [vmem:[%s9223_s1 + $0x1008] ss:$40 sps:$4 sm:$0xff]  }
 0x1d7   :  { %4459 = vmatpush1.bf16.msra.mxu1 %v6720_v39  ;;  %v6807_v39 = vld [vmem:[%s9223_s1 + $0x610] ss:$40 sps:$4 sm:$0xff]  }
 0x1d8   :  { %4541 = vmatpush1.bf16.msra.mxu0 %v6723_v40  ;;  %4460 = vmatprep.subr.bf16.mxu1 %v6728_v41  ;;  %v6812_v40 = vld [vmem:[%s9223_s1 + $0x105c] ss:$40 sps:$4 sm:$0xff]  }
 0x1d9   :  { %4542 = vmatprep.subr.bf16.mxu0 %v6731_v42  ;;  %v6815_v41 = vld [vmem:[%s9223_s1 + $0x664] ss:$40 sps:$4 sm:$0xff]   ;;  %v6810_v42 = vld [vmem:[%s9223_s1 + $0x1058] ss:$40 sps:$4 sm:$0xff]  }
 0x1db   :  { %4461 = vmatpush1.bf16.msra.mxu1 %v6726_v43  ;;  %v6813_v43 = vld [vmem:[%s9223_s1 + $0x660] ss:$40 sps:$4 sm:$0xff]  }
 0x1dc   :  { %4543 = vmatpush1.bf16.msra.mxu0 %v6729_v44  ;;  %4462 = vmatprep.subr.bf16.mxu1 %v6734_v45  ;;  %v6818_v44 = vld [vmem:[%s9223_s1 + $0x10ac] ss:$40 sps:$4 sm:$0xff]  }
 0x1dd   :  { %4544 = vmatprep.subr.bf16.mxu0 %v6737_v46  ;;  %v6821_v45 = vld [vmem:[%s9223_s1 + $0x6b4] ss:$40 sps:$4 sm:$0xff]   ;;  %v6816_v46 = vld [vmem:[%s9223_s1 + $0x10a8] ss:$40 sps:$4 sm:$0xff]  }
 0x1df   :  { %4463 = vmatpush1.bf16.msra.mxu1 %v6732_v48  ;;  %v6819_v48 = vld [vmem:[%s9223_s1 + $0x6b0] ss:$40 sps:$4 sm:$0xff]  }
 0x1e0   :  { %4545 = vmatpush1.bf16.msra.mxu0 %v6735_v49  ;;  %4464 = vmatprep.subr.bf16.mxu1 %v6740_v50  ;;  %v6824_v49 = vld [vmem:[%s9223_s1 + $0x10fc] ss:$40 sps:$4 sm:$0xff]  }
 0x1e1   :  { %4546 = vmatprep.subr.bf16.mxu0 %v6743_v52  ;;  %v6827_v50 = vld [vmem:[%s9223_s1 + $0x704] ss:$40 sps:$4 sm:$0xff]  }
 0x1e3   :  { %4465 = vmatpush1.bf16.msra.mxu1 %v6738_v53 }
 0x1e4   :  { %4547 = vmatpush1.bf16.msra.mxu0 %v6741_v54  ;;  %4466 = vmatprep.subr.bf16.mxu1 %v6746_v55  ;;  %v6822_v55 = vld [vmem:[%s9223_s1 + $0x10f8] ss:$40 sps:$4 sm:$0xff]  }
 0x1e5   :  { %4548 = vmatprep.subr.bf16.mxu0 %v6749_v56  ;;  %v6825_v56 = vld [vmem:[%s9223_s1 + $0x700] ss:$40 sps:$4 sm:$0xff]  }
 0x1e7   :  { %4467 = vmatpush1.bf16.msra.mxu1 %v6744_v57 }
 0x1e8   :  { %4549 = vmatpush1.bf16.msra.mxu0 %v6747_v58  ;;  %4468 = vmatprep.subr.bf16.mxu1 %v6752_v59  ;;  %v6830_v58 = vld [vmem:[%s9223_s1 + $0x114c] ss:$40 sps:$4 sm:$0xff]  }
 0x1e9   :  { %4550 = vmatprep.subr.bf16.mxu0 %v6755_v60  ;;  %v6833_v59 = vld [vmem:[%s9223_s1 + $0x754] ss:$40 sps:$4 sm:$0xff]   ;;  %v6828_v60 = vld [vmem:[%s9223_s1 + $0x1148] ss:$40 sps:$4 sm:$0xff]  }
 0x1eb   :  { %4469 = vmatpush1.bf16.msra.mxu1 %v6750_v61  ;;  %v6831_v61 = vld [vmem:[%s9223_s1 + $0x750] ss:$40 sps:$4 sm:$0xff]  }
 0x1ec   :  { %4551 = vmatpush1.bf16.msra.mxu0 %v6753_v62  ;;  %4470 = vmatprep.subr.bf16.mxu1 %v6758_v63  ;;  %v6836_v62 = vld [vmem:[%s9223_s1 + $0x119c] ss:$40 sps:$4 sm:$0xff]  }
 0x1ed   :  { %4552 = vmatprep.subr.bf16.mxu0 %v6761_v0  ;;  %v6839_v63 = vld [vmem:[%s9223_s1 + $0x7a4] ss:$40 sps:$4 sm:$0xff]   ;;  %v6834_v0 = vld [vmem:[%s9223_s1 + $0x1198] ss:$40 sps:$4 sm:$0xff]  }
 0x1ef   :  { %4471 = vmatpush1.bf16.msra.mxu1 %v6756_v1  ;;  %v6837_v1 = vld [vmem:[%s9223_s1 + $0x7a0] ss:$40 sps:$4 sm:$0xff]  }
 0x1f0   :  { %4553 = vmatpush1.bf16.msra.mxu0 %v6759_v4  ;;  %4472 = vmatprep.subr.bf16.mxu1 %v6764_v5  ;;  %v6842_v4 = vld [vmem:[%s9223_s1 + $0x11ec] ss:$40 sps:$4 sm:$0xff]  }
 0x1f1   :  { %4554 = vmatprep.subr.bf16.mxu0 %v6767_v6  ;;  %v6845_v5 = vld [vmem:[%s9223_s1 + $0x7f4] ss:$40 sps:$4 sm:$0xff]   ;;  %v6840_v6 = vld [vmem:[%s9223_s1 + $0x11e8] ss:$40 sps:$4 sm:$0xff]  }
 0x1f3   :  { %4473 = vmatpush1.bf16.msra.mxu1 %v6762_v7  ;;  %v6843_v7 = vld [vmem:[%s9223_s1 + $0x7f0] ss:$40 sps:$4 sm:$0xff]  }
 0x1f4   :  { %4555 = vmatpush1.bf16.msra.mxu0 %v6765_v8  ;;  %4474 = vmatprep.subr.bf16.mxu1 %v6770_v9  ;;  %v6848_v8 = vld [vmem:[%s9223_s1 + $0x123c] ss:$40 sps:$4 sm:$0xff]  }
 0x1f5   :  { %4556 = vmatprep.subr.bf16.mxu0 %v6773_v12  ;;  %v6851_v9 = vld [vmem:[%s9223_s1 + $0x844] ss:$40 sps:$4 sm:$0xff]   ;;  %v6846_v12 = vld [vmem:[%s9223_s1 + $0x1238] ss:$40 sps:$4 sm:$0xff]  }
 0x1f7   :  { %4475 = vmatpush1.bf16.msra.mxu1 %v6768_v13  ;;  %v6849_v13 = vld [vmem:[%s9223_s1 + $0x840] ss:$40 sps:$4 sm:$0xff]  }
 0x1f8   :  { %4557 = vmatpush1.bf16.msra.mxu0 %v6771_v14  ;;  %4476 = vmatprep.subr.bf16.mxu1 %v6776_v15  ;;  %v6854_v14 = vld [vmem:[%s9223_s1 + $0x128c] ss:$40 sps:$4 sm:$0xff]  }
 0x1f9   :  { %4558 = vmatprep.subr.bf16.mxu0 %v6779_v16  ;;  %v6857_v15 = vld [vmem:[%s9223_s1 + $0x894] ss:$40 sps:$4 sm:$0xff]   ;;  %v6852_v16 = vld [vmem:[%s9223_s1 + $0x1288] ss:$40 sps:$4 sm:$0xff]  }
 0x1fb   :  { %4477 = vmatpush1.bf16.msra.mxu1 %v6774_v18  ;;  %v6855_v18 = vld [vmem:[%s9223_s1 + $0x890] ss:$40 sps:$4 sm:$0xff]  }
 0x1fc   :  { %4559 = vmatpush1.bf16.msra.mxu0 %v6777_v19  ;;  %4478 = vmatprep.subr.bf16.mxu1 %v6782_v20  ;;  %v6860_v19 = vld [vmem:[%s9223_s1 + $0x12dc] ss:$40 sps:$4 sm:$0xff]  }
 0x1fd   :  { %4560 = vmatprep.subr.bf16.mxu0 %v6785_v21  ;;  %v6863_v20 = vld [vmem:[%s9223_s1 + $0x8e4] ss:$40 sps:$4 sm:$0xff]   ;;  %v6858_v21 = vld [vmem:[%s9223_s1 + $0x12d8] ss:$40 sps:$4 sm:$0xff]  }
 0x1ff   :  { %4479 = vmatpush1.bf16.msra.mxu1 %v6780_v22  ;;  %v6861_v22 = vld [vmem:[%s9223_s1 + $0x8e0] ss:$40 sps:$4 sm:$0xff]  }
 0x200   :  { %4561 = vmatpush1.bf16.msra.mxu0 %v6783_v23  ;;  %4489 = vmatprep.subr.bf16.mxu1 %v6788_v24  ;;  %v6866_v23 = vld [vmem:[%s9223_s1 + $0x132c] ss:$40 sps:$4 sm:$0xff]  }
 0x201   :  { %4571 = vmatprep.subr.bf16.mxu0 %v6791_v26  ;;  %v6869_v24 = vld [vmem:[%s9223_s1 + $0x934] ss:$40 sps:$4 sm:$0xff]   ;;  %v6864_v26 = vld [vmem:[%s9223_s1 + $0x1328] ss:$40 sps:$4 sm:$0xff]  }
 0x202   :  { %4481 = vmatmul.mubr.bf16.vlgmr.msra.gmra.mrb[8].mxu1 %v7479_v17 }
 0x203   :  { %4563 = vmatmul.mubr.bf16.vlgmr.msra.gmra.mrb[8].mxu0 %v7277_v10  ;;  %4490 = vmatpush1.bf16.msra.mxu1 %v6786_v27  ;;  %v6803_v10 = vld [vmem:[%s9223_s1 + $0x5c4] ss:$40 sps:$4 sm:$0xff]   ;;  %v6867_v27 = vld [vmem:[%s9223_s1 + $0x930] ss:$40 sps:$4 sm:$0xff]  }
 0x204   :  { %4572 = vmatpush1.bf16.msra.mxu0 %v6789_v29  ;;  %4491 = vmatprep.subr.bf16.mxu1 %v6794_v47  ;;  %v6872_v29 = vld [vmem:[%s9223_s1 + $0x137c] ss:$40 sps:$4 sm:$0xff]  }
 0x205   :  { %4573 = vmatprep.subr.bf16.mxu0 %v6797_v31  ;;  %4521 = vmatprep.mubr.bf16.mxu1 %v7504_v25  ;;  %v6875_v47 = vld [vmem:[%s9223_s1 + $0x984] ss:$40 sps:$4 sm:$0xff]   ;;  %v6870_v31 = vld [vmem:[%s9223_s1 + $0x1378] ss:$40 sps:$4 sm:$0xff]  }
 0x206   :  { %4603 = vmatprep.mubr.bf16.mxu0 %v7207_v51  ;;  %v6809_v51 = vld [vmem:[%s9223_s1 + $0x614] ss:$40 sps:$4 sm:$0xff]  }
 0x207   :  { %4492 = vmatpush1.bf16.msra.mxu1 %v6792_v33  ;;  %v6873_v33 = vld [vmem:[%s9223_s1 + $0x980] ss:$40 sps:$4 sm:$0xff]  }
 0x208   :  { %4574 = vmatpush1.bf16.msra.mxu0 %v6795_v34  ;;  %4493 = vmatprep.subr.bf16.mxu1 %v6800_v35  ;;  %v6878_v34 = vld [vmem:[%s9223_s1 + $0x13cc] ss:$40 sps:$4 sm:$0xff]  }
 0x209   :  { %4575 = vmatprep.subr.bf16.mxu0 %v6803_v10  ;;  %v6881_v35 = vld [vmem:[%s9223_s1 + $0x9d4] ss:$40 sps:$4 sm:$0xff]   ;;  %v6876_v10 = vld [vmem:[%s9223_s1 + $0x13c8] ss:$40 sps:$4 sm:$0xff]  }
 0x20b   :  { %4494 = vmatpush1.bf16.msra.mxu1 %v6798_v37  ;;  %v6879_v37 = vld [vmem:[%s9223_s1 + $0x9d0] ss:$40 sps:$4 sm:$0xff]  }
 0x20c   :  { %4576 = vmatpush1.bf16.msra.mxu0 %v6801_v2  ;;  %4495 = vmatprep.subr.bf16.mxu1 %v6806_v3  ;;  %v6884_v2 = vld [vmem:[%s9223_s1 + $0xa24] ss:$40 sps:$4 sm:$0xff]   ;;  %v6882_v3 = vld [vmem:[%s9223_s1 + $0xa20] ss:$40 sps:$4 sm:$0xff]  }
 0x20d   :  { %4577 = vmatprep.subr.bf16.mxu0 %v6809_v51  ;;  %v6887_v51 = vld [vmem:[%s9223_s1 + $0xa74] ss:$40 sps:$4 sm:$0xff]  }
 0x20f   :  { %4496 = vmatpush1.bf16.msra.mxu1 %v6804_v38  ;;  %v6885_v38 = vld [vmem:[%s9223_s1 + $0xa70] ss:$40 sps:$4 sm:$0xff]  }
 0x210   :  { %4578 = vmatpush1.bf16.msra.mxu0 %v6807_v39  ;;  %4497 = vmatprep.subr.bf16.mxu1 %v6812_v40  ;;  %v6890_v39 = vld [vmem:[%s9223_s1 + $0xac4] ss:$40 sps:$4 sm:$0xff]  }
 0x211   :  { %4579 = vmatprep.subr.bf16.mxu0 %v6815_v41  ;;  %v6978_v40 = vld [vmem:[%s9225_s2 + $0x40] sm:$0xff]  }
 0x212   :  { %v6888_v41 = vld [vmem:[%s9223_s1 + $0xac0] ss:$40 sps:$4 sm:$0xff]  }
 0x213   :  { %4498 = vmatpush1.bf16.msra.mxu1 %v6810_v42  ;;  %v6980_v42 = vld [vmem:[%s9225_s2 + $0x48] sm:$0xff]  }
 0x214   :  { %4580 = vmatpush1.bf16.msra.mxu0 %v6813_v43  ;;  %4499 = vmatprep.subr.bf16.mxu1 %v6818_v44  ;;  %v6981_v43 = vld [vmem:[%s9225_s2 + $0x8] sm:$0xff]   ;;  %v6982_v44 = vld [vmem:[%s9225_s2 + $0x50] sm:$0xff]  }
 0x215   :  { %4581 = vmatprep.subr.bf16.mxu0 %v6821_v45  ;;  %v8753_v52 = vpop.f32.mrb[4].mxu1  ;;  %v6891_v45 = vld [vmem:[%s9223_s1 + $0xb10] ss:$40 sps:$4 sm:$0xff]  }
 0x216   :  { %v8755_v53 = vpop.f32.mrb[5].mxu1 }
 0x217   :  { %v4199_v54 = vpop.f32.mrb[6].mxu1  ;;  %4500 = vmatpush1.bf16.msra.mxu1 %v6816_v46  ;;  %v6896_v46 = vld [vmem:[%s9223_s1 + $0xb64] ss:$40 sps:$4 sm:$0xff]  }
 0x218   :  { %4582 = vmatpush1.bf16.msra.mxu0 %v6819_v48  ;;  %v4200_v57 = vpop.f32.mrb[7].mxu1  ;;  %4501 = vmatprep.subr.bf16.mxu1 %v6824_v49  ;;  %v6894_v48 = vld [vmem:[%s9223_s1 + $0xb60] ss:$40 sps:$4 sm:$0xff]   ;;  %v6899_v49 = vld [vmem:[%s9223_s1 + $0xbb4] ss:$40 sps:$4 sm:$0xff]  }
 0x219   :  { %4583 = vmatprep.subr.bf16.mxu0 %v6827_v50  ;;  %v6897_v50 = vld [vmem:[%s9223_s1 + $0xbb0] ss:$40 sps:$4 sm:$0xff]   ;;  %v6902_v54 = vld [vmem:[%s9223_s1 + $0xc04] ss:$40 sps:$4 sm:$0xff]  }
 0x21a   :  { %v6903_v57 = vld [vmem:[%s9223_s1 + $0xc50] ss:$40 sps:$4 sm:$0xff]  }
 0x21b   :  { %4502 = vmatpush1.bf16.msra.mxu1 %v6822_v55  ;;  %v6900_v55 = vld [vmem:[%s9223_s1 + $0xc00] ss:$40 sps:$4 sm:$0xff]  }
 0x21c   :  { %4584 = vmatpush1.bf16.msra.mxu0 %v6825_v56  ;;  %4503 = vmatprep.subr.bf16.mxu1 %v6830_v58  ;;  %v6905_v56 = vld [vmem:[%s9223_s1 + $0xc54] ss:$40 sps:$4 sm:$0xff]   ;;  %v6908_v58 = vld [vmem:[%s9223_s1 + $0xca4] ss:$40 sps:$4 sm:$0xff]  }
 0x21d   :  { %4585 = vmatprep.subr.bf16.mxu0 %v6833_v59  ;;  %v6906_v59 = vld [vmem:[%s9223_s1 + $0xca0] ss:$40 sps:$4 sm:$0xff]  }
 0x21f   :  { %4504 = vmatpush1.bf16.msra.mxu1 %v6828_v60  ;;  %v6911_v60 = vld [vmem:[%s9223_s1 + $0xcf4] ss:$40 sps:$4 sm:$0xff]  }
 0x220   :  { %4586 = vmatpush1.bf16.msra.mxu0 %v6831_v61  ;;  %4505 = vmatprep.subr.bf16.mxu1 %v6836_v62  ;;  %v6909_v61 = vld [vmem:[%s9223_s1 + $0xcf0] ss:$40 sps:$4 sm:$0xff]   ;;  %v6914_v62 = vld [vmem:[%s9223_s1 + $0xd44] ss:$40 sps:$4 sm:$0xff]  }
 0x221   :  { %4587 = vmatprep.subr.bf16.mxu0 %v6839_v63  ;;  %v6912_v63 = vld [vmem:[%s9223_s1 + $0xd40] ss:$40 sps:$4 sm:$0xff]  }
 0x223   :  { %4506 = vmatpush1.bf16.msra.mxu1 %v6834_v0  ;;  %v6917_v0 = vld [vmem:[%s9223_s1 + $0xd94] ss:$40 sps:$4 sm:$0xff]  }
 0x224   :  { %4588 = vmatpush1.bf16.msra.mxu0 %v6837_v1  ;;  %4507 = vmatprep.subr.bf16.mxu1 %v6842_v4  ;;  %v6915_v1 = vld [vmem:[%s9223_s1 + $0xd90] ss:$40 sps:$4 sm:$0xff]   ;;  %v6920_v4 = vld [vmem:[%s9223_s1 + $0xde4] ss:$40 sps:$4 sm:$0xff]  }
 0x225   :  { %4589 = vmatprep.subr.bf16.mxu0 %v6845_v5  ;;  %v6918_v5 = vld [vmem:[%s9223_s1 + $0xde0] ss:$40 sps:$4 sm:$0xff]  }
 0x227   :  { %4508 = vmatpush1.bf16.msra.mxu1 %v6840_v6  ;;  %v6923_v6 = vld [vmem:[%s9223_s1 + $0xe34] ss:$40 sps:$4 sm:$0xff]  }
 0x228   :  { %4590 = vmatpush1.bf16.msra.mxu0 %v6843_v7  ;;  %4509 = vmatprep.subr.bf16.mxu1 %v6848_v8  ;;  %v6921_v7 = vld [vmem:[%s9223_s1 + $0xe30] ss:$40 sps:$4 sm:$0xff]   ;;  %v6926_v8 = vld [vmem:[%s9223_s1 + $0xe84] ss:$40 sps:$4 sm:$0xff]  }
 0x229   :  { %4591 = vmatprep.subr.bf16.mxu0 %v6851_v9  ;;  %v6924_v9 = vld [vmem:[%s9223_s1 + $0xe80] ss:$40 sps:$4 sm:$0xff]  }
 0x22b   :  { %4510 = vmatpush1.bf16.msra.mxu1 %v6846_v12  ;;  %v6929_v12 = vld [vmem:[%s9223_s1 + $0xed4] ss:$40 sps:$4 sm:$0xff]  }
 0x22c   :  { %4592 = vmatpush1.bf16.msra.mxu0 %v6849_v13  ;;  %4511 = vmatprep.subr.bf16.mxu1 %v6854_v14  ;;  %v6927_v13 = vld [vmem:[%s9223_s1 + $0xed0] ss:$40 sps:$4 sm:$0xff]   ;;  %v6932_v14 = vld [vmem:[%s9223_s1 + $0xf24] ss:$40 sps:$4 sm:$0xff]  }
 0x22d   :  { %4593 = vmatprep.subr.bf16.mxu0 %v6857_v15  ;;  %v6930_v15 = vld [vmem:[%s9223_s1 + $0xf20] ss:$40 sps:$4 sm:$0xff]  }
 0x22f   :  { %4512 = vmatpush1.bf16.msra.mxu1 %v6852_v16  ;;  %v6935_v16 = vld [vmem:[%s9223_s1 + $0xf74] ss:$40 sps:$4 sm:$0xff]  }
 0x230   :  { %4594 = vmatpush1.bf16.msra.mxu0 %v6855_v18  ;;  %4513 = vmatprep.subr.bf16.mxu1 %v6860_v19  ;;  %v6933_v18 = vld [vmem:[%s9223_s1 + $0xf70] ss:$40 sps:$4 sm:$0xff]   ;;  %v6938_v19 = vld [vmem:[%s9223_s1 + $0xfc4] ss:$40 sps:$4 sm:$0xff]  }
 0x231   :  { %4595 = vmatprep.subr.bf16.mxu0 %v6863_v20  ;;  %v6936_v20 = vld [vmem:[%s9223_s1 + $0xfc0] ss:$40 sps:$4 sm:$0xff]  }
 0x233   :  { %4514 = vmatpush1.bf16.msra.mxu1 %v6858_v21  ;;  %v6944_v21 = vld [vmem:[%s9223_s1 + $0x1064] ss:$40 sps:$4 sm:$0xff]  }
 0x234   :  { %4596 = vmatpush1.bf16.msra.mxu0 %v6861_v22  ;;  %4515 = vmatprep.subr.bf16.mxu1 %v6866_v23  ;;  %v6942_v22 = vld [vmem:[%s9223_s1 + $0x1060] ss:$40 sps:$4 sm:$0xff]   ;;  %v6947_v23 = vld [vmem:[%s9223_s1 + $0x10b4] ss:$40 sps:$4 sm:$0xff]  }
 0x235   :  { %4597 = vmatprep.subr.bf16.mxu0 %v6869_v24  ;;  %v6945_v24 = vld [vmem:[%s9223_s1 + $0x10b0] ss:$40 sps:$4 sm:$0xff]  }
 0x237   :  { %4516 = vmatpush1.bf16.msra.mxu1 %v6864_v26  ;;  %v6983_v26 = vld [vmem:[%s9225_s2 + $0x10] sm:$0xff]  }
 0x238   :  { %4598 = vmatpush1.bf16.msra.mxu0 %v6867_v27  ;;  %4517 = vmatprep.subr.bf16.mxu1 %v6872_v29  ;;  %v6950_v27 = vld [vmem:[%s9223_s1 + $0x1104] ss:$40 sps:$4 sm:$0xff]  }
 0x239   :  { %4599 = vmatprep.subr.bf16.mxu0 %v6875_v47 }
 0x23b   :  { %4518 = vmatpush1.bf16.msra.mxu1 %v6870_v31  ;;  %v6984_v31 = vld [vmem:[%s9225_s2 + $0x58] sm:$0xff]  }
 0x23c   :  { %4600 = vmatpush1.bf16.msra.mxu0 %v6873_v33  ;;  %4519 = vmatprep.subr.bf16.mxu1 %v6878_v34  ;;  %v4694_v33 = vmul.f32 %v8356_v30, %v8356_v30  ;;  %v6986_v30 = vld [vmem:[%s9225_s2 + $0x60] sm:$0xff]  }
 0x23d   :  { %4601 = vmatprep.subr.bf16.mxu0 %v6881_v35 }
 0x23f   :  { %4520 = vmatpush1.bf16.msra.mxu1 %v6876_v10  ;;  %v6948_v10 = vld [vmem:[%s9223_s1 + $0x1100] ss:$40 sps:$4 sm:$0xff]  }
 0x240   :  { %4602 = vmatpush1.bf16.msra.mxu0 %v6879_v37  ;;  %5885 = vmatprep.subr.bf16.mxu1 %v6978_v40  ;;  %v6985_v37 = vld [vmem:[%s9225_s2 + $0x18] sm:$0xff]   ;;  %v6988_v40 = vld [vmem:[%s9225_s2 + $0x68] sm:$0xff]  }
 0x241   :  { %4612 = vmatprep.subr.bf16.mxu0 %v6884_v2 }
 0x242   :  { %4522 = vmatmul.mubr.bf16.vlgmr.msra.gmra.mrb[8].mxu1 %v7685_v28 }
 0x243   :  { %4604 = vmatmul.mubr.bf16.vlgmr.msra.gmra.mrb[8].mxu0 %v7279_v11  ;;  %v6979_v11 = vld [vmem:[%s9225_s2] sm:$0xff]  }
 0x244   :  { %4613 = vmatpush1.bf16.msra.mxu0 %v6882_v3  ;;  %4644 = vmatprep.mubr.bf16.mxu0 %v7356_v36  ;;  %v6893_v36 = vld [vmem:[%s9223_s1 + $0xb14] ss:$40 sps:$4 sm:$0xff]  }
 0x245   :  { %4614 = vmatprep.subr.bf16.mxu0 %v6887_v51  ;;  %5886 = vmatpush3.bf16.msra.mxu1 %v6979_v11  ;;  %v6953_v3 = vld [vmem:[%s9223_s1 + $0x1154] ss:$40 sps:$4 sm:$0xff]   ;;  %v6956_v11 = vld [vmem:[%s9223_s1 + $0x11a4] ss:$40 sps:$4 sm:$0xff]  }
 0x246   :  { %5887 = vmatprep.subr.bf16.mxu1 %v6980_v42  ;;  %v6990_v42 = vld [vmem:[%s9225_s2 + $0x70] sm:$0xff]  }
 0x248   :  { %4615 = vmatpush1.bf16.msra.mxu0 %v6885_v38  ;;  %v6951_v38 = vld [vmem:[%s9223_s1 + $0x1150] ss:$40 sps:$4 sm:$0xff]  }
 0x249   :  { %4616 = vmatprep.subr.bf16.mxu0 %v6890_v39  ;;  %5888 = vmatpush3.bf16.msra.mxu1 %v6981_v43  ;;  %v6987_v39 = vld [vmem:[%s9225_s2 + $0x20] sm:$0xff]   ;;  %v6959_v43 = vld [vmem:[%s9223_s1 + $0x11f4] ss:$40 sps:$4 sm:$0xff]  }
 0x24a   :  { %5889 = vmatprep.subr.bf16.mxu1 %v6982_v44  ;;  %v6991_v44 = vld [vmem:[%s9225_s2 + $0x30] sm:$0xff]  }
 0x24c   :  { %4617 = vmatpush1.bf16.msra.mxu0 %v6888_v41  ;;  %v6989_v41 = vld [vmem:[%s9225_s2 + $0x28] sm:$0xff]  }
 0x24d   :  { %4618 = vmatprep.subr.bf16.mxu0 %v6893_v36  ;;  %5890 = vmatpush3.bf16.msra.mxu1 %v6983_v26  ;;  %v6954_v36 = vld [vmem:[%s9223_s1 + $0x11a0] ss:$40 sps:$4 sm:$0xff]  }
 0x24e   :  { %5891 = vmatprep.subr.bf16.mxu1 %v6984_v31  ;;  %v6997_v26 = vld [vmem:[%s9225_s2 + $0x88] sm:$0xff]   ;;  %v7000_v31 = vld [vmem:[%s9225_s2 + $0xd8] sm:$0xff]  }
 0x250   :  { %4619 = vmatpush1.bf16.msra.mxu0 %v6891_v45  ;;  %v6992_v45 = vld [vmem:[%s9225_s2 + $0x78] sm:$0xff]  }
 0x251   :  { %4620 = vmatprep.subr.bf16.mxu0 %v6896_v46  ;;  %5892 = vmatpush3.bf16.msra.mxu1 %v6985_v37  ;;  %v6957_v46 = vld [vmem:[%s9223_s1 + $0x11f0] ss:$40 sps:$4 sm:$0xff]   ;;  %v7005_v37 = vld [vmem:[%s9225_s2 + $0xa8] sm:$0xff]  }
 0x252   :  { %5893 = vmatprep.subr.bf16.mxu1 %v6986_v30  ;;  %v7009_v30 = vld [vmem:[%s9225_s2 + $0xb8] sm:$0xff]  }
 0x254   :  { %4621 = vmatpush1.bf16.msra.mxu0 %v6894_v48  ;;  %v6962_v48 = vld [vmem:[%s9223_s1 + $0x1244] ss:$40 sps:$4 sm:$0xff]  }
 0x255   :  { %4622 = vmatprep.subr.bf16.mxu0 %v6899_v49  ;;  %5894 = vmatpush3.bf16.msra.mxu1 %v6987_v39  ;;  %v6993_v49 = vld [vmem:[%s9225_s2 + $0x38] sm:$0xff]  }
 0x256   :  { %5895 = vmatprep.subr.bf16.mxu1 %v6988_v40  ;;  %v4697_v40 = vmul.f32 %v8755_v53, %v8755_v53 }
 0x258   :  { %4623 = vmatpush1.bf16.msra.mxu0 %v6897_v50  ;;  %v6960_v50 = vld [vmem:[%s9223_s1 + $0x1240] ss:$40 sps:$4 sm:$0xff]  }
 0x259   :  { %4624 = vmatprep.subr.bf16.mxu0 %v6902_v54  ;;  %5896 = vmatpush3.bf16.msra.mxu1 %v6989_v41  ;;  %v6965_v54 = vld [vmem:[%s9223_s1 + $0x1294] ss:$40 sps:$4 sm:$0xff]  }
 0x25a   :  { %5897 = vmatprep.subr.bf16.mxu1 %v6990_v42 }
 0x25c   :  { %4625 = vmatpush1.bf16.msra.mxu0 %v6900_v55  ;;  %v6963_v55 = vld [vmem:[%s9223_s1 + $0x1290] ss:$40 sps:$4 sm:$0xff]  }
 0x25d   :  { %4626 = vmatprep.subr.bf16.mxu0 %v6905_v56  ;;  %5898 = vmatpush3.bf16.msra.mxu1 %v6991_v44  ;;  %v6968_v56 = vld [vmem:[%s9223_s1 + $0x12e4] ss:$40 sps:$4 sm:$0xff]  }
 0x25e   :  { %5899 = vmatprep.subr.bf16.mxu1 %v6992_v45 }
 0x260   :  { %4627 = vmatpush1.bf16.msra.mxu0 %v6903_v57  ;;  %v6994_v57 = vld [vmem:[%s9225_s2 + $0xc0] sm:$0xff]  }
 0x261   :  { %4628 = vmatprep.subr.bf16.mxu0 %v6908_v58  ;;  %5900 = vmatpush3.bf16.msra.mxu1 %v6993_v49  ;;  %v6966_v58 = vld [vmem:[%s9223_s1 + $0x12e0] ss:$40 sps:$4 sm:$0xff]  }
 0x262   :  { %5907 = vmatprep.subr.bf16.mxu1 %v6994_v57 }
 0x264   :  { %4629 = vmatpush1.bf16.msra.mxu0 %v6906_v59  ;;  %v6971_v59 = vld [vmem:[%s9223_s1 + $0x1334] ss:$40 sps:$4 sm:$0xff]  }
 0x265   :  { %4630 = vmatprep.subr.bf16.mxu0 %v6911_v60  ;;  %v6969_v60 = vld [vmem:[%s9223_s1 + $0x1330] ss:$40 sps:$4 sm:$0xff]  }
 0x268   :  { %4631 = vmatpush1.bf16.msra.mxu0 %v6909_v61  ;;  %v6974_v61 = vld [vmem:[%s9223_s1 + $0x1384] ss:$40 sps:$4 sm:$0xff]  }
 0x269   :  { %4632 = vmatprep.subr.bf16.mxu0 %v6914_v62  ;;  %v6972_v62 = vld [vmem:[%s9223_s1 + $0x1380] ss:$40 sps:$4 sm:$0xff]  }
 0x26c   :  { %4633 = vmatpush1.bf16.msra.mxu0 %v6912_v63  ;;  %v6977_v63 = vld [vmem:[%s9223_s1 + $0x13d4] ss:$40 sps:$4 sm:$0xff]  }
 0x26d   :  { %4634 = vmatprep.subr.bf16.mxu0 %v6917_v0  ;;  %v6975_v0 = vld [vmem:[%s9223_s1 + $0x13d0] ss:$40 sps:$4 sm:$0xff]  }
 0x270   :  { %4635 = vmatpush1.bf16.msra.mxu0 %v6915_v1 }
 0x271   :  { %4636 = vmatprep.subr.bf16.mxu0 %v6920_v4  ;;  %v4695_v4 = vmul.f32 %v8359_v32, %v8359_v32 }
 0x274   :  { %4637 = vmatpush1.bf16.msra.mxu0 %v6918_v5 }
 0x275   :  { %4638 = vmatprep.subr.bf16.mxu0 %v6923_v6 }
 0x278   :  { %4639 = vmatpush1.bf16.msra.mxu0 %v6921_v7  ;;  %v4696_v7 = vmul.f32 %v8753_v52, %v8753_v52 }
 0x279   :  { %4640 = vmatprep.subr.bf16.mxu0 %v6926_v8 }
 0x27c   :  { %4641 = vmatpush1.bf16.msra.mxu0 %v6924_v9 }
 0x27d   :  { %4642 = vmatprep.subr.bf16.mxu0 %v6929_v12 }
 0x280   :  { %4643 = vmatpush1.bf16.msra.mxu0 %v6927_v13 }
 0x281   :  { %4653 = vmatprep.subr.bf16.mxu0 %v6932_v14 }
 0x283   :  { %4645 = vmatmul.mubr.bf16.vlgmr.msra.gmra.mrb[8].mxu0 %v7479_v17  ;;  %v6941_v17 = vld [vmem:[%s9223_s1 + $0x1014] ss:$40 sps:$4 sm:$0xff]  }
 0x284   :  { %4654 = vmatpush1.bf16.msra.mxu0 %v6930_v15  ;;  %4685 = vmatprep.mubr.bf16.mxu0 %v7504_v25  ;;  %v6939_v25 = vld [vmem:[%s9223_s1 + $0x1010] ss:$40 sps:$4 sm:$0xff]  }
 0x285   :  { %4655 = vmatprep.subr.bf16.mxu0 %v6935_v16 }
 0x288   :  { %4656 = vmatpush1.bf16.msra.mxu0 %v6933_v18 }
 0x289   :  { %4657 = vmatprep.subr.bf16.mxu0 %v6938_v19 }
 0x28c   :  { %4658 = vmatpush1.bf16.msra.mxu0 %v6936_v20 }
 0x28d   :  { %4659 = vmatprep.subr.bf16.mxu0 %v6941_v17 }
 0x290   :  { %4660 = vmatpush1.bf16.msra.mxu0 %v6939_v25 }
 0x291   :  { %4661 = vmatprep.subr.bf16.mxu0 %v6944_v21 }
 0x294   :  { %4662 = vmatpush1.bf16.msra.mxu0 %v6942_v22  ;;  %v6995_v22 = vld [vmem:[%s9225_s2 + $0x80] sm:$0xff]  }
 0x295   :  { %4663 = vmatprep.subr.bf16.mxu0 %v6947_v23 }
 0x296   :  { %v9029_v29 = vpop.f32.mrb[4].mxu0 }
 0x297   :  { %v4361_v47 = vpop.f32.mrb[5].mxu0  ;;  %v4698_v42 = vmul.f32 %v9029_v29, %v9029_v29 }
 0x298   :  { %v4699_v34 = vmul.f32 %v4361_v47, %v4361_v47  ;;  %v4363_v35 = vpop.f32.mrb[6].mxu0  ;;  %4664 = vmatpush1.bf16.msra.mxu0 %v6945_v24  ;;  %v6996_v24 = vld [vmem:[%s9225_s2 + $0xc8] sm:$0xff]   ;;  %v6999_v47 = vld [vmem:[%s9225_s2 + $0x90] sm:$0xff]  }
 0x299   :  { %v4364_v2 = vpop.f32.mrb[7].mxu0  ;;  %4665 = vmatprep.subr.bf16.mxu0 %v6950_v27  ;;  %v6998_v27 = vld [vmem:[%s9225_s2 + $0xd0] sm:$0xff]   ;;  %v7003_v35 = vld [vmem:[%s9225_s2 + $0xa0] sm:$0xff]  }
 0x29a   :  { %v9045_v51 = vadd.f32 %v4699_v34, %v4694_v33  ;;  %v7001_v33 = vld [vmem:[%s9225_s2 + $0x98] sm:$0xff]   ;;  %v7002_v34 = vld [vmem:[%s9225_s2 + $0xe0] sm:$0xff]   ;;  %v7006_v2 = vld [vmem:[%s9225_s2 + $0xf0] sm:$0xff]  }
 0x29c   :  { %4666 = vmatpush1.bf16.msra.mxu0 %v6948_v10  ;;  %7018 = vrsqrt.f32 %v9045_v51  ;;  %vm4711_vm0 = vcmp.eq.f32.partialorder %v9045_v51, inf  ;;  %v4714_v19 = vand.u32 2147483648, %v9045_v51  ;;  %vm4713_vm2 = vcmp.eq.f32.partialorder %v9045_v51, 0.0  ;;  %v7004_v10 = vld [vmem:[%s9225_s2 + $0xe8] sm:$0xff]  }
 0x29d   :  { %4667 = vmatprep.subr.bf16.mxu0 %v6953_v3  ;;  %v7007_v3 = vld [vmem:[%s9225_s2 + $0xb0] sm:$0xff]  }
 0x2a0   :  { %4668 = vmatpush1.bf16.msra.mxu0 %v6951_v38  ;;  %v7028_v38 = vmov 0.0  }
 0x2a1   :  { %4669 = vmatprep.subr.bf16.mxu0 %v6956_v11 }
 0x2a4   :  { %4670 = vmatpush1.bf16.msra.mxu0 %v6954_v36 }
 0x2a5   :  { %4671 = vmatprep.subr.bf16.mxu0 %v6959_v43 }
 0x2a6   :  { %v7019_v15 = vpop.eup %7018 }
 0x2a8   :  { %4672 = vmatpush1.bf16.msra.mxu0 %v6957_v46 }
 0x2a9   :  { %4673 = vmatprep.subr.bf16.mxu0 %v6962_v48 }
 0x2ac   :  { %4674 = vmatpush1.bf16.msra.mxu0 %v6960_v50 }
 0x2ad   :  { %4675 = vmatprep.subr.bf16.mxu0 %v6965_v54 }
 0x2b0   :  { %4676 = vmatpush1.bf16.msra.mxu0 %v6963_v55 }
 0x2b1   :  { %4677 = vmatprep.subr.bf16.mxu0 %v6968_v56 }
 0x2b4   :  { %4678 = vmatpush1.bf16.msra.mxu0 %v6966_v58 }
 0x2b5   :  { %4679 = vmatprep.subr.bf16.mxu0 %v6971_v59 }
 0x2b8   :  { %4680 = vmatpush1.bf16.msra.mxu0 %v6969_v60  ;;  %v7010_v60 = vld [vmem:[%s9225_s2 + $0x100] sm:$0xff]  }
 0x2b9   :  { %4681 = vmatprep.subr.bf16.mxu0 %v6974_v61 }
 0x2bc   :  { %4682 = vmatpush1.bf16.msra.mxu0 %v6972_v62  ;;  %v7011_v62 = vld [vmem:[%s9225_s2 + $0x108] sm:$0xff]  }
 0x2bd   :  { %4683 = vmatprep.subr.bf16.mxu0 %v6977_v63  ;;  %v7012_v63 = vld [vmem:[%s9225_s2 + $0x110] sm:$0xff]  }
 0x2c0   :  { %4684 = vmatpush1.bf16.msra.mxu0 %v6975_v0  ;;  %v7013_v0 = vld [vmem:[%s9225_s2 + $0x118] sm:$0xff]  }
 0x2c3   :  { %4686 = vmatmul.mubr.bf16.vlgmr.msra.gmra.mrb[8].mxu0 %v7685_v28  ;;  %v4710_v28 = vmul.f32 %v7019_v15, %v9045_v51 }
 0x2c5   :  { %v4712_v32 = vsel %vm4711_vm0, %v9045_v51, %v4710_v28  ;;  %v7008_v51 = vld [vmem:[%s9225_s2 + $0xf8] sm:$0xff]  }
 0x2c6   :  { %v4715_v17 = vsel %vm4713_vm2, %v4714_v19, %v4712_v32  ;;  %v5844_v19 = vld [vmem:[%s9226_s3] ss:$0 sm:$0xff] }
 0x2c7   :  { %v4744_v23 = vpack.c.bf16 %v4715_v17, %v4715_v17 }
 0x315   :  { %v4523_v1 = vpop.f32.mrb[8].mxu1 }
 0x316   :  { %v4700_v5 = vmul.f32 %v4523_v1, %v4523_v1  ;;  %v4525_v6 = vpop.f32.mrb[9].mxu1  ;;  %v7014_v1 = vld [vmem:[%s9225_s2 + $0x120] sm:$0xff]  }
 0x317   :  { %v4701_v8 = vmul.f32 %v4525_v6, %v4525_v6  ;;  %v4527_v9 = vpop.f32.mrb[10].mxu1 }
 0x318   :  { %v4705_v12 = vadd.f32 %v4700_v5, %v4695_v4  ;;  %v4528_v13 = vpop.f32.mrb[11].mxu1  ;;  %v7015_v5 = vld [vmem:[%s9225_s2 + $0x128] sm:$0xff]   ;;  %v7017_v9 = vld [vmem:[%s9225_s2 + $0x138] sm:$0xff]  }
 0x319   :  { %v9131_v14 = vadd.f32 %v4701_v8, %v4696_v7  ;;  %v7016_v7 = vld [vmem:[%s9225_s2 + $0x130] sm:$0xff]  }
 0x31a   :  { %7020 = vrsqrt.f32 %v4705_v12  ;;  %vm4718_vm1 = vcmp.eq.f32.partialorder %v4705_v12, inf  ;;  %v4721_v52 = vand.u32 2147483648, %v4705_v12  ;;  %vm4720_vm3 = vcmp.eq.f32.partialorder %v4705_v12, 0.0 }
 0x31b   :  { %7022 = vrsqrt.f32 %v9131_v14  ;;  %vm4725_vm4 = vcmp.eq.f32.partialorder %v9131_v14, inf  ;;  %v4728_v55 = vand.u32 2147483648, %v9131_v14  ;;  %vm4727_vm6 = vcmp.eq.f32.partialorder %v9131_v14, 0.0 }
 0x324   :  { %v7021_v16 = vpop.eup %7020 }
 0x325   :  { %v4717_v18 = vmul.f32 %v7021_v16, %v4705_v12  ;;  %v7023_v48 = vpop.eup %7022 }
 0x326   :  { %v4724_v49 = vmul.f32 %v7023_v48, %v9131_v14 }
 0x327   :  { %v4719_v20 = vsel %vm4718_vm1, %v4705_v12, %v4717_v18 }
 0x328   :  { %v4722_v25 = vsel %vm4720_vm3, %v4721_v52, %v4719_v20  ;;  %v4726_v54 = vsel %vm4725_vm4, %v9131_v14, %v4724_v49 }
 0x329   :  { %v4745_v21 = vpack.c.bf16 %v4722_v25, %v4722_v25  ;;  %v4729_v57 = vsel %vm4727_vm6, %v4728_v55, %v4726_v54 }
 0x32a   :  { %v4746_v61 = vpack.c.bf16 %v4729_v57, %v4729_v57 }
 0x32b   :  { %5108 = vmatprep.mubr.bf16.mxu1 %v4745_v21 }
 0x32c   :  { %5109 = vmatmul.mubr.bf16.vlgmr.msra.gmra.mrb[12].mxu1 %v4744_v23 }
 0x32d   :  { %5908 = vmatpush3.bf16.msra.mxu1 %v6995_v22 }
 0x32e   :  { %5909 = vmatprep.subr.bf16.mxu1 %v6996_v24 }
 0x331   :  { %5910 = vmatpush3.bf16.msra.mxu1 %v6997_v26 }
 0x332   :  { %5911 = vmatprep.subr.bf16.mxu1 %v6998_v27 }
 0x335   :  { %5912 = vmatpush3.bf16.msra.mxu1 %v6999_v47 }
 0x336   :  { %5913 = vmatprep.subr.bf16.mxu1 %v7000_v31 }
 0x339   :  { %5914 = vmatpush3.bf16.msra.mxu1 %v7001_v33 }
 0x33a   :  { %5915 = vmatprep.subr.bf16.mxu1 %v7002_v34 }
 0x33d   :  { %5916 = vmatpush3.bf16.msra.mxu1 %v7003_v35 }
 0x33e   :  { %5917 = vmatprep.subr.bf16.mxu1 %v7004_v10 }
 0x341   :  { %5918 = vmatpush3.bf16.msra.mxu1 %v7005_v37 }
 0x342   :  { %5919 = vmatprep.subr.bf16.mxu1 %v7006_v2 }
 0x345   :  { %5920 = vmatpush3.bf16.msra.mxu1 %v7007_v3 }
 0x346   :  { %5921 = vmatprep.subr.bf16.mxu1 %v7008_v51 }
 0x349   :  { %5922 = vmatpush3.bf16.msra.mxu1 %v7009_v30 }
 0x34a   :  { %5938 = vmatprep.subr.bf16.mxu1 %v7028_v38 }
 0x396   :  { %v4687_v39 = vpop.f32.mrb[8].mxu0 }
 0x397   :  { %v4702_v11 = vmul.f32 %v4687_v39, %v4687_v39  ;;  %v4689_v41 = vpop.f32.mrb[9].mxu0 }
 0x398   :  { %v4703_v36 = vmul.f32 %v4689_v41, %v4689_v41  ;;  %v4691_v43 = vpop.f32.mrb[10].mxu0 }
 0x399   :  { %v4707_v44 = vadd.f32 %v4702_v11, %v4697_v40  ;;  %v4692_v45 = vpop.f32.mrb[11].mxu0 }
 0x39a   :  { %v4708_v46 = vadd.f32 %v4703_v36, %v4698_v42 }
 0x39b   :  { %7024 = vrsqrt.f32 %v4707_v44  ;;  %vm4732_vm5 = vcmp.eq.f32.partialorder %v4707_v44, inf  ;;  %v4735_v56 = vand.u32 2147483648, %v4707_v44  ;;  %vm4734_vm7 = vcmp.eq.f32.partialorder %v4707_v44, 0.0 }
 0x39c   :  { %7026 = vrsqrt.f32 %v4708_v46  ;;  %vm4739_vm9 = vcmp.eq.f32.partialorder %v4708_v46, inf  ;;  %v4742_v12 = vand.u32 2147483648, %v4708_v46  ;;  %vm4741_vm10 = vcmp.eq.f32.partialorder %v4708_v46, 0.0 }
 0x3a5   :  { %v7025_v50 = vpop.eup %7024 }
 0x3a6   :  { %v4731_v53 = vmul.f32 %v7025_v50, %v4707_v44  ;;  %v7027_v4 = vpop.eup %7026 }
 0x3a7   :  { %v4738_v6 = vmul.f32 %v7027_v4, %v4708_v46 }
 0x3a8   :  { %v4733_v29 = vsel %vm4732_vm5, %v4707_v44, %v4731_v53 }
 0x3a9   :  { %v4736_v58 = vsel %vm4734_vm7, %v4735_v56, %v4733_v29  ;;  %v4740_v8 = vsel %vm4739_vm9, %v4708_v46, %v4738_v6 }
 0x3aa   :  { %v4747_v59 = vpack.c.bf16 %v4736_v58, %v4736_v58  ;;  %v4743_v13 = vsel %vm4741_vm10, %v4742_v12, %v4740_v8 }
 0x3ab   :  { %v4748_v14 = vpack.c.bf16 %v4743_v13, %v4743_v13 }
 0x3ac   :  { %5148 = vmatprep.mubr.bf16.mxu1 %v4747_v59 }
 0x3ad   :  { %5149 = vmatmul.mubr.bf16.vlgmr.msra.gmra.mrb[16].mxu1 %v4746_v61 }
 0x3ae   :  { %5939 = vmatpush3.bf16.msra.mxu1 %v7010_v60  ;;  %5954 = vmatprep.mubr.msk.bf16.mxu1 %vm7029_vm8, %v7028_v38 }
 0x3af   :  { %5940 = vmatprep.subr.bf16.mxu1 %v7028_v38 }
 0x3b2   :  { %5941 = vmatpush3.bf16.msra.mxu1 %v7011_v62 }
 0x3b3   :  { %5942 = vmatprep.subr.bf16.mxu1 %v7028_v38 }
 0x3b6   :  { %5943 = vmatpush3.bf16.msra.mxu1 %v7012_v63 }
 0x3b7   :  { %5944 = vmatprep.subr.bf16.mxu1 %v7028_v38 }
 0x3ba   :  { %5945 = vmatpush3.bf16.msra.mxu1 %v7013_v0 }
 0x3bb   :  { %5946 = vmatprep.subr.bf16.mxu1 %v7028_v38 }
 0x3be   :  { %5947 = vmatpush3.bf16.msra.mxu1 %v7014_v1 }
 0x3bf   :  { %5948 = vmatprep.subr.bf16.mxu1 %v7028_v38 }
 0x3c2   :  { %5949 = vmatpush3.bf16.msra.mxu1 %v7015_v5 }
 0x3c3   :  { %5950 = vmatprep.subr.bf16.mxu1 %v7028_v38 }
 0x3c6   :  { %5951 = vmatpush3.bf16.msra.mxu1 %v7016_v7 }
 0x3c7   :  { %5952 = vmatprep.subr.bf16.mxu1 %v7028_v38 }
 0x3ca   :  { %5953 = vmatpush3.bf16.msra.mxu1 %v7017_v9 }
 0x3cd   :  { %5955 = vmatmul.mubr.bf16.vlgmr.msra.gmra.mrb[20].mxu1 %v4748_v14 }
 0x3ff   :  { %v5901_v15 = vpop.f32.mrb[12].mxu1 }
 0x400   :  { %v5902_v28 = vpop.f32.mrb[13].mxu1 }
 0x401   :  { %v5903_v16 = vadd.f32 %v5902_v28, %v5901_v15  ;;  %v5904_v32 = vpop.f32.mrb[14].mxu1 }
 0x402   :  { %v5905_v18 = vpop.f32.mrb[15].mxu1 }
 0x403   :  { %v5111_v17 = vadd.f32 %v5903_v16, %v5844_v19 }
 0x480   :  { %v5923_v52 = vpop.f32.mrb[16].mxu1 }
 0x481   :  { %v5924_v20 = vpop.f32.mrb[17].mxu1 }
 0x482   :  { %v5925_v25 = vadd.f32 %v5924_v20, %v5923_v52  ;;  %v5926_v21 = vpop.f32.mrb[18].mxu1 }
 0x483   :  { %v5927_v22 = vpop.f32.mrb[19].mxu1 }
 0x484   :  { %v5151_v23 = vadd.f32 %v5925_v25, %v5111_v17 }
 0x4a0   :  { %v5190_v24 = vpop.f32.mrb[20].mxu1 }
 0x4a1   :  { %v5191_v26 = vadd.f32 %v5190_v24, %v5151_v23  ;;  %v5956_v27 = vpop.f32.mrb[21].mxu1 }
 0x4a2   :  { %v5193_v47 = vpop.f32.mrb[22].mxu1 }
 0x4a3   :  { %vm5196_vm11 = vcmp.ge.f32.partialorder %v5191_v26, 0.0  ;;  %v5197_v31 = vmul.f32 0.02, %v5191_v26  ;;  %v5957_v33 = vpop.f32.mrb[23].mxu1 }
 0x4a5   :  { %v5198_v34 = vsel %vm5196_vm11, %v5191_v26, %v5197_v31 }
 0x4a6   :  { %5199 = vst [vmem:[%s9227_s4] sm:$0xff] %v5198_v34 }

</bundles_post_ra>
